<compile_context>
chip_gen: v7x
topology: tpu7x:2x2x1
jax: 0.10.0
libtpu: 0.0.40
codegen_flags: <defaults>
</compile_context>

<pallas_src>
import numpy as np
import jax
import jax.numpy as jnp
from jax.experimental import pallas as pl
from jax.experimental.pallas import tpu as pltpu


# ----------------------------------------------------------------------------
# Fused kernel factory (num_layers / T / B / H are compile-time constants)
# ----------------------------------------------------------------------------
def make_fused_lstm_kernel(num_layers, T, B, H):
    G = 4 * H  # packed gate width, PyTorch order i|f|g|o

    def kernel(*refs):
        # refs layout:
        #   x (T*B, D), Wi_0 (D, 4H), b_0 (1, 4H),
        #   for l in 0..L-2: [Wh_l | Wi_{l+1}] (H, 8H), b_{l+1} (1, 4H),
        #   Wh_{L-1} (H, 4H), fc_w (H, O), fc_b (1, O), out (B, O)
        x_ref, wi0_ref, b0_ref = refs[0], refs[1], refs[2]
        idx = 3
        rec_w_refs, b_next_refs = [], []
        for _ in range(num_layers - 1):
            rec_w_refs.append(refs[idx]); idx += 1
            b_next_refs.append(refs[idx]); idx += 1
        rec_w_refs.append(refs[idx]); idx += 1          # last layer: Wh only
        fcw_ref, fcb_ref, out_ref = refs[idx], refs[idx + 1], refs[idx + 2]

        def sigmoid(z):
            # exact identity: one EUP push (tanh); *0.5/+0.5 ride free VPU slots
            return 0.5 * jnp.tanh(0.5 * z) + 0.5

        # ---- layer-0 input projection for the whole sequence: one big MXU matmul,
        #      result kept in vregs (no VMEM scratch) ----
        xproj_full = (
            jnp.dot(x_ref[...], wi0_ref[...], preferred_element_type=jnp.float32)
            + b0_ref[...]                                # combined b_ih + b_hh
        )
        xproj = [xproj_full[t * B:(t + 1) * B, :] for t in range(T)]   # T x (B, 4H)

        h = None
        for l in range(num_layers):
            last_layer = (l == num_layers - 1)
            rec_w = rec_w_refs[l][...]                   # (H, 8H) or (H, 4H) last layer
            if not last_layer:
                b_next = b_next_refs[l][...]
                xproj_next = []

            c = jnp.zeros((B, H), jnp.float32)
            rec_prev = None                              # h_{t-1} @ Wh_l (lanes [0, 4H))

            for t in range(T):
                # t == 0: h0 == 0, recurrent matmul contributes nothing -> skip it.
                pre = xproj[t] if t == 0 else xproj[t] + rec_prev      # (B, 4H)

                # activations on the full 128-lane vreg: 2 EUP passes instead of 4
                sig_all = sigmoid(pre)
                tanh_all = jnp.tanh(pre)
                i_g = sig_all[:, 0 * H:1 * H]
                f_g = sig_all[:, 1 * H:2 * H]
                g_g = tanh_all[:, 2 * H:3 * H]
                o_g = sig_all[:, 3 * H:4 * H]

                c = f_g * c + i_g * g_g
                h = o_g * jnp.tanh(c)

                # One matmul per step: [h @ Wh_l | h @ Wi_{l+1}].  Skipped entirely on the
                # last step of the last layer (nothing consumes it).
                need_mm = (t < T - 1) or (not last_layer)
                if need_mm:
                    z = jnp.dot(h, rec_w, preferred_element_type=jnp.float32)
                    rec_prev = z[:, :G]
                    if not last_layer:
                        xproj_next.append(z[:, G:] + b_next)   # next layer's pre-act @ t

            if not last_layer:
                xproj = xproj_next

        # ---- fc(out[:, -1, :]).sigmoid() ----
        out_ref[...] = sigmoid(
            jnp.dot(h, fcw_ref[...], preferred_element_type=jnp.float32) + fcb_ref[...]
        ).astype(out_ref.dtype)

    return kernel


# ----------------------------------------------------------------------------
# Wrapper
# ----------------------------------------------------------------------------
_VMEM = pl.BlockSpec(memory_space=pltpu.MemorySpace.VMEM)


def lstm_model_forward(x_btd, layers, fc_w, fc_b):
    """x_btd: (B, T, input_size) batch-first, like the PyTorch module. Returns (B, output_size)."""
    B, T, D = x_btd.shape
    H = layers[0]["wh"].shape[0]
    O = fc_w.shape[1]
    L = len(layers)

    # time-major then flatten: row t*B + b holds x[b, t, :] (no in-kernel reshapes needed)
    x_2d = jnp.transpose(x_btd, (1, 0, 2)).reshape(T * B, D).astype(jnp.float32)

    args = [x_2d, layers[0]["wi"], layers[0]["b"]]
    for l in range(L - 1):
        # pack [Wh_l | Wi_{l+1}] -> (H, 8H): one 256-lane recurrent RHS per step
        rec_w = jnp.concatenate([layers[l]["wh"], layers[l + 1]["wi"]], axis=1)
        args += [rec_w, layers[l + 1]["b"]]
    args += [layers[L - 1]["wh"], fc_w, fc_b]

    kernel = make_fused_lstm_kernel(L, T, B, H)
    return pl.pallas_call(
        kernel,
        out_shape=jax.ShapeDtypeStruct((B, O), jnp.float32),
        in_specs=[_VMEM] * len(args),
        out_specs=_VMEM,
    )(*args)


# ----------------------------------------------------------------------------
# Deterministic parameter init (packed gates, order i|f|g|o; combined b_ih+b_hh)
# ----------------------------------------------------------------------------
def init_params(key, input_size, hidden_size, num_layers, output_size):
    bound = 1.0 / np.sqrt(hidden_size)

    def uni(k, shape):
        return jax.random.uniform(k, shape, jnp.float32, -bound, bound)

    layers = []
    d_in = input_size
    for _ in range(num_layers):
        key, k1, k2, k3 = jax.random.split(key, 4)
        layers.append({
            "wi": uni(k1, (d_in, 4 * hidden_size)),          # x projection, gates packed
            "wh": uni(k2, (hidden_size, 4 * hidden_size)),   # h projection, gates packed
            "b":  uni(k3, (1, 4 * hidden_size)),             # combined bias
        })
        d_in = hidden_size

    key, kw, kb = jax.random.split(key, 3)
    fc_w = uni(kw, (hidden_size, output_size))
    fc_b = uni(kb, (1, output_size))
    return layers, fc_w, fc_b


# ----------------------------------------------------------------------------
# Pure-JAX reference (standard LSTM math, no Pallas) for a correctness check
# ----------------------------------------------------------------------------
def reference_forward(x_btd, layers, fc_w, fc_b):
    B = x_btd.shape[0]
    H = layers[0]["wh"].shape[0]
    seq = jnp.transpose(x_btd, (1, 0, 2)).astype(jnp.float32)   # (T, B, D)
    for p in layers:
        h = jnp.zeros((B, H), jnp.float32)
        c = jnp.zeros((B, H), jnp.float32)
        outs = []
        for t in range(seq.shape[0]):
            pre = seq[t] @ p["wi"] + h @ p["wh"] + p["b"]
            i = jax.nn.sigmoid(pre[:, 0 * H:1 * H])
            f = jax.nn.sigmoid(pre[:, 1 * H:2 * H])
            g = jnp.tanh(pre[:, 2 * H:3 * H])
            o = jax.nn.sigmoid(pre[:, 3 * H:4 * H])
            c = f * c + i * g
            h = o * jnp.tanh(c)
            outs.append(h)
        seq = jnp.stack(outs, axis=0)
    return jax.nn.sigmoid(seq[-1] @ fc_w + fc_b)


# ----------------------------------------------------------------------------
if __name__ == "__main__":
    # Small shapes consistent with the module: batch=8, seq=8, input=16, hidden=32, layers=2, out=4
    B, T, INPUT, HIDDEN, LAYERS, OUT = 8, 8, 16, 32, 2, 4

    key = jax.random.PRNGKey(0)
    key, k_x = jax.random.split(key)
    x = jax.random.normal(k_x, (B, T, INPUT), jnp.float32)   # batch-first, like PyTorch

    layers, fc_w, fc_b = init_params(key, INPUT, HIDDEN, LAYERS, OUT)

    out = lstm_model_forward(x, layers, fc_w, fc_b)
    out = jax.block_until_ready(out)

    ref = reference_forward(x, layers, fc_w, fc_b)
    # Kernel uses the exact sigmoid(x) = 0.5*tanh(0.5x) + 0.5 identity (ulp-level deltas
    # vs jax.nn.sigmoid accumulate through the recurrence) -> small tolerance margin.
    np.testing.assert_allclose(np.asarray(out), np.asarray(ref), rtol=5e-5, atol=5e-5)

    print("KERNEL_OK")
</pallas_src>

<mosaic_0001>
module attributes {stable_mosaic.version = 11 : i64} {
  func.func @kernel(%arg0: memref<64x16xf32, #tpu.memory_space<vmem>>, %arg1: memref<16x128xf32, #tpu.memory_space<vmem>>, %arg2: memref<1x128xf32, #tpu.memory_space<vmem>>, %arg3: memref<32x256xf32, #tpu.memory_space<vmem>>, %arg4: memref<1x128xf32, #tpu.memory_space<vmem>>, %arg5: memref<32x128xf32, #tpu.memory_space<vmem>>, %arg6: memref<32x4xf32, #tpu.memory_space<vmem>>, %arg7: memref<1x4xf32, #tpu.memory_space<vmem>>, %arg8: memref<8x4xf32, #tpu.memory_space<vmem>>) attributes {dimension_semantics = [], scalar_prefetch = 0 : i64, scratch_operands = 0 : i64, tpu.core_type = #tpu.core_type<tc>} {
    %c0 = arith.constant 0 : index
    %c0_0 = arith.constant 0 : index
    %0 = vector.load %arg0[%c0, %c0_0] : memref<64x16xf32, #tpu.memory_space<vmem>>, vector<64x16xf32>
    %c0_1 = arith.constant 0 : index
    %c0_2 = arith.constant 0 : index
    %1 = vector.load %arg1[%c0_1, %c0_2] : memref<16x128xf32, #tpu.memory_space<vmem>>, vector<16x128xf32>
    %cst = arith.constant dense<0.000000e+00> : vector<64x128xf32>
    %2 = tpu.matmul %0, %1, %cst {dimension_numbers = #tpu.dot_dimension_numbers<[1], [0], [0], [1], [0, 0, 1, 1], [], []>} : vector<64x16xf32>, vector<16x128xf32>, vector<64x128xf32> -> vector<64x128xf32>
    %c0_3 = arith.constant 0 : index
    %c0_4 = arith.constant 0 : index
    %3 = vector.load %arg2[%c0_3, %c0_4] : memref<1x128xf32, #tpu.memory_space<vmem>>, vector<1x128xf32>
    %4 = vector.broadcast %3 : vector<1x128xf32> to vector<64x128xf32>
    %5 = arith.addf %2, %4 : vector<64x128xf32>
    %6 = vector.extract_strided_slice %5 {offsets = [0, 0], sizes = [8, 128], strides = [1, 1]} : vector<64x128xf32> to vector<8x128xf32>
    %7 = vector.extract_strided_slice %5 {offsets = [8, 0], sizes = [8, 128], strides = [1, 1]} : vector<64x128xf32> to vector<8x128xf32>
    %8 = vector.extract_strided_slice %5 {offsets = [16, 0], sizes = [8, 128], strides = [1, 1]} : vector<64x128xf32> to vector<8x128xf32>
    %9 = vector.extract_strided_slice %5 {offsets = [24, 0], sizes = [8, 128], strides = [1, 1]} : vector<64x128xf32> to vector<8x128xf32>
    %10 = vector.extract_strided_slice %5 {offsets = [32, 0], sizes = [8, 128], strides = [1, 1]} : vector<64x128xf32> to vector<8x128xf32>
    %11 = vector.extract_strided_slice %5 {offsets = [40, 0], sizes = [8, 128], strides = [1, 1]} : vector<64x128xf32> to vector<8x128xf32>
    %12 = vector.extract_strided_slice %5 {offsets = [48, 0], sizes = [8, 128], strides = [1, 1]} : vector<64x128xf32> to vector<8x128xf32>
    %13 = vector.extract_strided_slice %5 {offsets = [56, 0], sizes = [8, 128], strides = [1, 1]} : vector<64x128xf32> to vector<8x128xf32>
    %c0_5 = arith.constant 0 : index
    %c0_6 = arith.constant 0 : index
    %14 = vector.load %arg3[%c0_5, %c0_6] : memref<32x256xf32, #tpu.memory_space<vmem>>, vector<32x256xf32>
    %c0_7 = arith.constant 0 : index
    %c0_8 = arith.constant 0 : index
    %15 = vector.load %arg4[%c0_7, %c0_8] : memref<1x128xf32, #tpu.memory_space<vmem>>, vector<1x128xf32>
    %cst_9 = arith.constant 0.000000e+00 : f32
    %16 = vector.broadcast %cst_9 : f32 to vector<8x32xf32>
    %cst_10 = arith.constant 5.000000e-01 : f32
    %17 = vector.broadcast %cst_10 : f32 to vector<8x128xf32>
    %18 = arith.mulf %17, %6 : vector<8x128xf32>
    %19 = math.tanh %18 : vector<8x128xf32>
    %cst_11 = arith.constant 5.000000e-01 : f32
    %20 = vector.broadcast %cst_11 : f32 to vector<8x128xf32>
    %21 = arith.mulf %20, %19 : vector<8x128xf32>
    %cst_12 = arith.constant 5.000000e-01 : f32
    %22 = vector.broadcast %cst_12 : f32 to vector<8x128xf32>
    %23 = arith.addf %21, %22 : vector<8x128xf32>
    %24 = math.tanh %6 : vector<8x128xf32>
    %25 = vector.extract_strided_slice %23 {offsets = [0, 0], sizes = [8, 32], strides = [1, 1]} : vector<8x128xf32> to vector<8x32xf32>
    %26 = vector.extract_strided_slice %23 {offsets = [0, 32], sizes = [8, 32], strides = [1, 1]} : vector<8x128xf32> to vector<8x32xf32>
    %27 = vector.extract_strided_slice %24 {offsets = [0, 64], sizes = [8, 32], strides = [1, 1]} : vector<8x128xf32> to vector<8x32xf32>
    %28 = vector.extract_strided_slice %23 {offsets = [0, 96], sizes = [8, 32], strides = [1, 1]} : vector<8x128xf32> to vector<8x32xf32>
    %29 = arith.mulf %26, %16 : vector<8x32xf32>
    %30 = arith.mulf %25, %27 : vector<8x32xf32>
    %31 = arith.addf %29, %30 : vector<8x32xf32>
    %32 = math.tanh %31 : vector<8x32xf32>
    %33 = arith.mulf %28, %32 : vector<8x32xf32>
    %cst_13 = arith.constant dense<0.000000e+00> : vector<8x256xf32>
    %34 = tpu.matmul %33, %14, %cst_13 {dimension_numbers = #tpu.dot_dimension_numbers<[1], [0], [0], [1], [0, 0, 1, 1], [], []>} : vector<8x32xf32>, vector<32x256xf32>, vector<8x256xf32> -> vector<8x256xf32>
    %35 = vector.extract_strided_slice %34 {offsets = [0, 0], sizes = [8, 128], strides = [1, 1]} : vector<8x256xf32> to vector<8x128xf32>
    %36 = vector.extract_strided_slice %34 {offsets = [0, 128], sizes = [8, 128], strides = [1, 1]} : vector<8x256xf32> to vector<8x128xf32>
    %37 = vector.broadcast %15 : vector<1x128xf32> to vector<8x128xf32>
    %38 = arith.addf %36, %37 : vector<8x128xf32>
    %39 = arith.addf %7, %35 : vector<8x128xf32>
    %cst_14 = arith.constant 5.000000e-01 : f32
    %40 = vector.broadcast %cst_14 : f32 to vector<8x128xf32>
    %41 = arith.mulf %40, %39 : vector<8x128xf32>
    %42 = math.tanh %41 : vector<8x128xf32>
    %cst_15 = arith.constant 5.000000e-01 : f32
    %43 = vector.broadcast %cst_15 : f32 to vector<8x128xf32>
    %44 = arith.mulf %43, %42 : vector<8x128xf32>
    %cst_16 = arith.constant 5.000000e-01 : f32
    %45 = vector.broadcast %cst_16 : f32 to vector<8x128xf32>
    %46 = arith.addf %44, %45 : vector<8x128xf32>
    %47 = math.tanh %39 : vector<8x128xf32>
    %48 = vector.extract_strided_slice %46 {offsets = [0, 0], sizes = [8, 32], strides = [1, 1]} : vector<8x128xf32> to vector<8x32xf32>
    %49 = vector.extract_strided_slice %46 {offsets = [0, 32], sizes = [8, 32], strides = [1, 1]} : vector<8x128xf32> to vector<8x32xf32>
    %50 = vector.extract_strided_slice %47 {offsets = [0, 64], sizes = [8, 32], strides = [1, 1]} : vector<8x128xf32> to vector<8x32xf32>
    %51 = vector.extract_strided_slice %46 {offsets = [0, 96], sizes = [8, 32], strides = [1, 1]} : vector<8x128xf32> to vector<8x32xf32>
    %52 = arith.mulf %49, %31 : vector<8x32xf32>
    %53 = arith.mulf %48, %50 : vector<8x32xf32>
    %54 = arith.addf %52, %53 : vector<8x32xf32>
    %55 = math.tanh %54 : vector<8x32xf32>
    %56 = arith.mulf %51, %55 : vector<8x32xf32>
    %cst_17 = arith.constant dense<0.000000e+00> : vector<8x256xf32>
    %57 = tpu.matmul %56, %14, %cst_17 {dimension_numbers = #tpu.dot_dimension_numbers<[1], [0], [0], [1], [0, 0, 1, 1], [], []>} : vector<8x32xf32>, vector<32x256xf32>, vector<8x256xf32> -> vector<8x256xf32>
    %58 = vector.extract_strided_slice %57 {offsets = [0, 0], sizes = [8, 128], strides = [1, 1]} : vector<8x256xf32> to vector<8x128xf32>
    %59 = vector.extract_strided_slice %57 {offsets = [0, 128], sizes = [8, 128], strides = [1, 1]} : vector<8x256xf32> to vector<8x128xf32>
    %60 = vector.broadcast %15 : vector<1x128xf32> to vector<8x128xf32>
    %61 = arith.addf %59, %60 : vector<8x128xf32>
    %62 = arith.addf %8, %58 : vector<8x128xf32>
    %cst_18 = arith.constant 5.000000e-01 : f32
    %63 = vector.broadcast %cst_18 : f32 to vector<8x128xf32>
    %64 = arith.mulf %63, %62 : vector<8x128xf32>
    %65 = math.tanh %64 : vector<8x128xf32>
    %cst_19 = arith.constant 5.000000e-01 : f32
    %66 = vector.broadcast %cst_19 : f32 to vector<8x128xf32>
    %67 = arith.mulf %66, %65 : vector<8x128xf32>
    %cst_20 = arith.constant 5.000000e-01 : f32
    %68 = vector.broadcast %cst_20 : f32 to vector<8x128xf32>
    %69 = arith.addf %67, %68 : vector<8x128xf32>
    %70 = math.tanh %62 : vector<8x128xf32>
    %71 = vector.extract_strided_slice %69 {offsets = [0, 0], sizes = [8, 32], strides = [1, 1]} : vector<8x128xf32> to vector<8x32xf32>
    %72 = vector.extract_strided_slice %69 {offsets = [0, 32], sizes = [8, 32], strides = [1, 1]} : vector<8x128xf32> to vector<8x32xf32>
    %73 = vector.extract_strided_slice %70 {offsets = [0, 64], sizes = [8, 32], strides = [1, 1]} : vector<8x128xf32> to vector<8x32xf32>
    %74 = vector.extract_strided_slice %69 {offsets = [0, 96], sizes = [8, 32], strides = [1, 1]} : vector<8x128xf32> to vector<8x32xf32>
    %75 = arith.mulf %72, %54 : vector<8x32xf32>
    %76 = arith.mulf %71, %73 : vector<8x32xf32>
    %77 = arith.addf %75, %76 : vector<8x32xf32>
    %78 = math.tanh %77 : vector<8x32xf32>
    %79 = arith.mulf %74, %78 : vector<8x32xf32>
    %cst_21 = arith.constant dense<0.000000e+00> : vector<8x256xf32>
    %80 = tpu.matmul %79, %14, %cst_21 {dimension_numbers = #tpu.dot_dimension_numbers<[1], [0], [0], [1], [0, 0, 1, 1], [], []>} : vector<8x32xf32>, vector<32x256xf32>, vector<8x256xf32> -> vector<8x256xf32>
    %81 = vector.extract_strided_slice %80 {offsets = [0, 0], sizes = [8, 128], strides = [1, 1]} : vector<8x256xf32> to vector<8x128xf32>
    %82 = vector.extract_strided_slice %80 {offsets = [0, 128], sizes = [8, 128], strides = [1, 1]} : vector<8x256xf32> to vector<8x128xf32>
    %83 = vector.broadcast %15 : vector<1x128xf32> to vector<8x128xf32>
    %84 = arith.addf %82, %83 : vector<8x128xf32>
    %85 = arith.addf %9, %81 : vector<8x128xf32>
    %cst_22 = arith.constant 5.000000e-01 : f32
    %86 = vector.broadcast %cst_22 : f32 to vector<8x128xf32>
    %87 = arith.mulf %86, %85 : vector<8x128xf32>
    %88 = math.tanh %87 : vector<8x128xf32>
    %cst_23 = arith.constant 5.000000e-01 : f32
    %89 = vector.broadcast %cst_23 : f32 to vector<8x128xf32>
    %90 = arith.mulf %89, %88 : vector<8x128xf32>
    %cst_24 = arith.constant 5.000000e-01 : f32
    %91 = vector.broadcast %cst_24 : f32 to vector<8x128xf32>
    %92 = arith.addf %90, %91 : vector<8x128xf32>
    %93 = math.tanh %85 : vector<8x128xf32>
    %94 = vector.extract_strided_slice %92 {offsets = [0, 0], sizes = [8, 32], strides = [1, 1]} : vector<8x128xf32> to vector<8x32xf32>
    %95 = vector.extract_strided_slice %92 {offsets = [0, 32], sizes = [8, 32], strides = [1, 1]} : vector<8x128xf32> to vector<8x32xf32>
    %96 = vector.extract_strided_slice %93 {offsets = [0, 64], sizes = [8, 32], strides = [1, 1]} : vector<8x128xf32> to vector<8x32xf32>
    %97 = vector.extract_strided_slice %92 {offsets = [0, 96], sizes = [8, 32], strides = [1, 1]} : vector<8x128xf32> to vector<8x32xf32>
    %98 = arith.mulf %95, %77 : vector<8x32xf32>
    %99 = arith.mulf %94, %96 : vector<8x32xf32>
    %100 = arith.addf %98, %99 : vector<8x32xf32>
    %101 = math.tanh %100 : vector<8x32xf32>
    %102 = arith.mulf %97, %101 : vector<8x32xf32>
    %cst_25 = arith.constant dense<0.000000e+00> : vector<8x256xf32>
    %103 = tpu.matmul %102, %14, %cst_25 {dimension_numbers = #tpu.dot_dimension_numbers<[1], [0], [0], [1], [0, 0, 1, 1], [], []>} : vector<8x32xf32>, vector<32x256xf32>, vector<8x256xf32> -> vector<8x256xf32>
    %104 = vector.extract_strided_slice %103 {offsets = [0, 0], sizes = [8, 128], strides = [1, 1]} : vector<8x256xf32> to vector<8x128xf32>
    %105 = vector.extract_strided_slice %103 {offsets = [0, 128], sizes = [8, 128], strides = [1, 1]} : vector<8x256xf32> to vector<8x128xf32>
    %106 = vector.broadcast %15 : vector<1x128xf32> to vector<8x128xf32>
    %107 = arith.addf %105, %106 : vector<8x128xf32>
    %108 = arith.addf %10, %104 : vector<8x128xf32>
    %cst_26 = arith.constant 5.000000e-01 : f32
    %109 = vector.broadcast %cst_26 : f32 to vector<8x128xf32>
    %110 = arith.mulf %109, %108 : vector<8x128xf32>
    %111 = math.tanh %110 : vector<8x128xf32>
    %cst_27 = arith.constant 5.000000e-01 : f32
    %112 = vector.broadcast %cst_27 : f32 to vector<8x128xf32>
    %113 = arith.mulf %112, %111 : vector<8x128xf32>
    %cst_28 = arith.constant 5.000000e-01 : f32
    %114 = vector.broadcast %cst_28 : f32 to vector<8x128xf32>
    %115 = arith.addf %113, %114 : vector<8x128xf32>
    %116 = math.tanh %108 : vector<8x128xf32>
    %117 = vector.extract_strided_slice %115 {offsets = [0, 0], sizes = [8, 32], strides = [1, 1]} : vector<8x128xf32> to vector<8x32xf32>
    %118 = vector.extract_strided_slice %115 {offsets = [0, 32], sizes = [8, 32], strides = [1, 1]} : vector<8x128xf32> to vector<8x32xf32>
    %119 = vector.extract_strided_slice %116 {offsets = [0, 64], sizes = [8, 32], strides = [1, 1]} : vector<8x128xf32> to vector<8x32xf32>
    %120 = vector.extract_strided_slice %115 {offsets = [0, 96], sizes = [8, 32], strides = [1, 1]} : vector<8x128xf32> to vector<8x32xf32>
    %121 = arith.mulf %118, %100 : vector<8x32xf32>
    %122 = arith.mulf %117, %119 : vector<8x32xf32>
    %123 = arith.addf %121, %122 : vector<8x32xf32>
    %124 = math.tanh %123 : vector<8x32xf32>
    %125 = arith.mulf %120, %124 : vector<8x32xf32>
    %cst_29 = arith.constant dense<0.000000e+00> : vector<8x256xf32>
    %126 = tpu.matmul %125, %14, %cst_29 {dimension_numbers = #tpu.dot_dimension_numbers<[1], [0], [0], [1], [0, 0, 1, 1], [], []>} : vector<8x32xf32>, vector<32x256xf32>, vector<8x256xf32> -> vector<8x256xf32>
    %127 = vector.extract_strided_slice %126 {offsets = [0, 0], sizes = [8, 128], strides = [1, 1]} : vector<8x256xf32> to vector<8x128xf32>
    %128 = vector.extract_strided_slice %126 {offsets = [0, 128], sizes = [8, 128], strides = [1, 1]} : vector<8x256xf32> to vector<8x128xf32>
    %129 = vector.broadcast %15 : vector<1x128xf32> to vector<8x128xf32>
    %130 = arith.addf %128, %129 : vector<8x128xf32>
    %131 = arith.addf %11, %127 : vector<8x128xf32>
    %cst_30 = arith.constant 5.000000e-01 : f32
    %132 = vector.broadcast %cst_30 : f32 to vector<8x128xf32>
    %133 = arith.mulf %132, %131 : vector<8x128xf32>
    %134 = math.tanh %133 : vector<8x128xf32>
    %cst_31 = arith.constant 5.000000e-01 : f32
    %135 = vector.broadcast %cst_31 : f32 to vector<8x128xf32>
    %136 = arith.mulf %135, %134 : vector<8x128xf32>
    %cst_32 = arith.constant 5.000000e-01 : f32
    %137 = vector.broadcast %cst_32 : f32 to vector<8x128xf32>
    %138 = arith.addf %136, %137 : vector<8x128xf32>
    %139 = math.tanh %131 : vector<8x128xf32>
    %140 = vector.extract_strided_slice %138 {offsets = [0, 0], sizes = [8, 32], strides = [1, 1]} : vector<8x128xf32> to vector<8x32xf32>
    %141 = vector.extract_strided_slice %138 {offsets = [0, 32], sizes = [8, 32], strides = [1, 1]} : vector<8x128xf32> to vector<8x32xf32>
    %142 = vector.extract_strided_slice %139 {offsets = [0, 64], sizes = [8, 32], strides = [1, 1]} : vector<8x128xf32> to vector<8x32xf32>
    %143 = vector.extract_strided_slice %138 {offsets = [0, 96], sizes = [8, 32], strides = [1, 1]} : vector<8x128xf32> to vector<8x32xf32>
    %144 = arith.mulf %141, %123 : vector<8x32xf32>
    %145 = arith.mulf %140, %142 : vector<8x32xf32>
    %146 = arith.addf %144, %145 : vector<8x32xf32>
    %147 = math.tanh %146 : vector<8x32xf32>
    %148 = arith.mulf %143, %147 : vector<8x32xf32>
    %cst_33 = arith.constant dense<0.000000e+00> : vector<8x256xf32>
    %149 = tpu.matmul %148, %14, %cst_33 {dimension_numbers = #tpu.dot_dimension_numbers<[1], [0], [0], [1], [0, 0, 1, 1], [], []>} : vector<8x32xf32>, vector<32x256xf32>, vector<8x256xf32> -> vector<8x256xf32>
    %150 = vector.extract_strided_slice %149 {offsets = [0, 0], sizes = [8, 128], strides = [1, 1]} : vector<8x256xf32> to vector<8x128xf32>
    %151 = vector.extract_strided_slice %149 {offsets = [0, 128], sizes = [8, 128], strides = [1, 1]} : vector<8x256xf32> to vector<8x128xf32>
    %152 = vector.broadcast %15 : vector<1x128xf32> to vector<8x128xf32>
    %153 = arith.addf %151, %152 : vector<8x128xf32>
    %154 = arith.addf %12, %150 : vector<8x128xf32>
    %cst_34 = arith.constant 5.000000e-01 : f32
    %155 = vector.broadcast %cst_34 : f32 to vector<8x128xf32>
    %156 = arith.mulf %155, %154 : vector<8x128xf32>
    %157 = math.tanh %156 : vector<8x128xf32>
    %cst_35 = arith.constant 5.000000e-01 : f32
    %158 = vector.broadcast %cst_35 : f32 to vector<8x128xf32>
    %159 = arith.mulf %158, %157 : vector<8x128xf32>
    %cst_36 = arith.constant 5.000000e-01 : f32
    %160 = vector.broadcast %cst_36 : f32 to vector<8x128xf32>
    %161 = arith.addf %159, %160 : vector<8x128xf32>
    %162 = math.tanh %154 : vector<8x128xf32>
    %163 = vector.extract_strided_slice %161 {offsets = [0, 0], sizes = [8, 32], strides = [1, 1]} : vector<8x128xf32> to vector<8x32xf32>
    %164 = vector.extract_strided_slice %161 {offsets = [0, 32], sizes = [8, 32], strides = [1, 1]} : vector<8x128xf32> to vector<8x32xf32>
    %165 = vector.extract_strided_slice %162 {offsets = [0, 64], sizes = [8, 32], strides = [1, 1]} : vector<8x128xf32> to vector<8x32xf32>
    %166 = vector.extract_strided_slice %161 {offsets = [0, 96], sizes = [8, 32], strides = [1, 1]} : vector<8x128xf32> to vector<8x32xf32>
    %167 = arith.mulf %164, %146 : vector<8x32xf32>
    %168 = arith.mulf %163, %165 : vector<8x32xf32>
    %169 = arith.addf %167, %168 : vector<8x32xf32>
    %170 = math.tanh %169 : vector<8x32xf32>
    %171 = arith.mulf %166, %170 : vector<8x32xf32>
    %cst_37 = arith.constant dense<0.000000e+00> : vector<8x256xf32>
    %172 = tpu.matmul %171, %14, %cst_37 {dimension_numbers = #tpu.dot_dimension_numbers<[1], [0], [0], [1], [0, 0, 1, 1], [], []>} : vector<8x32xf32>, vector<32x256xf32>, vector<8x256xf32> -> vector<8x256xf32>
    %173 = vector.extract_strided_slice %172 {offsets = [0, 0], sizes = [8, 128], strides = [1, 1]} : vector<8x256xf32> to vector<8x128xf32>
    %174 = vector.extract_strided_slice %172 {offsets = [0, 128], sizes = [8, 128], strides = [1, 1]} : vector<8x256xf32> to vector<8x128xf32>
    %175 = vector.broadcast %15 : vector<1x128xf32> to vector<8x128xf32>
    %176 = arith.addf %174, %175 : vector<8x128xf32>
    %177 = arith.addf %13, %173 : vector<8x128xf32>
    %cst_38 = arith.constant 5.000000e-01 : f32
    %178 = vector.broadcast %cst_38 : f32 to vector<8x128xf32>
    %179 = arith.mulf %178, %177 : vector<8x128xf32>
    %180 = math.tanh %179 : vector<8x128xf32>
    %cst_39 = arith.constant 5.000000e-01 : f32
    %181 = vector.broadcast %cst_39 : f32 to vector<8x128xf32>
    %182 = arith.mulf %181, %180 : vector<8x128xf32>
    %cst_40 = arith.constant 5.000000e-01 : f32
    %183 = vector.broadcast %cst_40 : f32 to vector<8x128xf32>
    %184 = arith.addf %182, %183 : vector<8x128xf32>
    %185 = math.tanh %177 : vector<8x128xf32>
    %186 = vector.extract_strided_slice %184 {offsets = [0, 0], sizes = [8, 32], strides = [1, 1]} : vector<8x128xf32> to vector<8x32xf32>
    %187 = vector.extract_strided_slice %184 {offsets = [0, 32], sizes = [8, 32], strides = [1, 1]} : vector<8x128xf32> to vector<8x32xf32>
    %188 = vector.extract_strided_slice %185 {offsets = [0, 64], sizes = [8, 32], strides = [1, 1]} : vector<8x128xf32> to vector<8x32xf32>
    %189 = vector.extract_strided_slice %184 {offsets = [0, 96], sizes = [8, 32], strides = [1, 1]} : vector<8x128xf32> to vector<8x32xf32>
    %190 = arith.mulf %187, %169 : vector<8x32xf32>
    %191 = arith.mulf %186, %188 : vector<8x32xf32>
    %192 = arith.addf %190, %191 : vector<8x32xf32>
    %193 = math.tanh %192 : vector<8x32xf32>
    %194 = arith.mulf %189, %193 : vector<8x32xf32>
    %cst_41 = arith.constant dense<0.000000e+00> : vector<8x256xf32>
    %195 = tpu.matmul %194, %14, %cst_41 {dimension_numbers = #tpu.dot_dimension_numbers<[1], [0], [0], [1], [0, 0, 1, 1], [], []>} : vector<8x32xf32>, vector<32x256xf32>, vector<8x256xf32> -> vector<8x256xf32>
    %196 = vector.extract_strided_slice %195 {offsets = [0, 128], sizes = [8, 128], strides = [1, 1]} : vector<8x256xf32> to vector<8x128xf32>
    %197 = vector.broadcast %15 : vector<1x128xf32> to vector<8x128xf32>
    %198 = arith.addf %196, %197 : vector<8x128xf32>
    %c0_42 = arith.constant 0 : index
    %c0_43 = arith.constant 0 : index
    %199 = vector.load %arg5[%c0_42, %c0_43] : memref<32x128xf32, #tpu.memory_space<vmem>>, vector<32x128xf32>
    %cst_44 = arith.constant 0.000000e+00 : f32
    %200 = vector.broadcast %cst_44 : f32 to vector<8x32xf32>
    %cst_45 = arith.constant 5.000000e-01 : f32
    %201 = vector.broadcast %cst_45 : f32 to vector<8x128xf32>
    %202 = arith.mulf %201, %38 : vector<8x128xf32>
    %203 = math.tanh %202 : vector<8x128xf32>
    %cst_46 = arith.constant 5.000000e-01 : f32
    %204 = vector.broadcast %cst_46 : f32 to vector<8x128xf32>
    %205 = arith.mulf %204, %203 : vector<8x128xf32>
    %cst_47 = arith.constant 5.000000e-01 : f32
    %206 = vector.broadcast %cst_47 : f32 to vector<8x128xf32>
    %207 = arith.addf %205, %206 : vector<8x128xf32>
    %208 = math.tanh %38 : vector<8x128xf32>
    %209 = vector.extract_strided_slice %207 {offsets = [0, 0], sizes = [8, 32], strides = [1, 1]} : vector<8x128xf32> to vector<8x32xf32>
    %210 = vector.extract_strided_slice %207 {offsets = [0, 32], sizes = [8, 32], strides = [1, 1]} : vector<8x128xf32> to vector<8x32xf32>
    %211 = vector.extract_strided_slice %208 {offsets = [0, 64], sizes = [8, 32], strides = [1, 1]} : vector<8x128xf32> to vector<8x32xf32>
    %212 = vector.extract_strided_slice %207 {offsets = [0, 96], sizes = [8, 32], strides = [1, 1]} : vector<8x128xf32> to vector<8x32xf32>
    %213 = arith.mulf %210, %200 : vector<8x32xf32>
    %214 = arith.mulf %209, %211 : vector<8x32xf32>
    %215 = arith.addf %213, %214 : vector<8x32xf32>
    %216 = math.tanh %215 : vector<8x32xf32>
    %217 = arith.mulf %212, %216 : vector<8x32xf32>
    %cst_48 = arith.constant dense<0.000000e+00> : vector<8x128xf32>
    %218 = tpu.matmul %217, %199, %cst_48 {dimension_numbers = #tpu.dot_dimension_numbers<[1], [0], [0], [1], [0, 0, 1, 1], [], []>} : vector<8x32xf32>, vector<32x128xf32>, vector<8x128xf32> -> vector<8x128xf32>
    %219 = arith.addf %61, %218 : vector<8x128xf32>
    %cst_49 = arith.constant 5.000000e-01 : f32
    %220 = vector.broadcast %cst_49 : f32 to vector<8x128xf32>
    %221 = arith.mulf %220, %219 : vector<8x128xf32>
    %222 = math.tanh %221 : vector<8x128xf32>
    %cst_50 = arith.constant 5.000000e-01 : f32
    %223 = vector.broadcast %cst_50 : f32 to vector<8x128xf32>
    %224 = arith.mulf %223, %222 : vector<8x128xf32>
    %cst_51 = arith.constant 5.000000e-01 : f32
    %225 = vector.broadcast %cst_51 : f32 to vector<8x128xf32>
    %226 = arith.addf %224, %225 : vector<8x128xf32>
    %227 = math.tanh %219 : vector<8x128xf32>
    %228 = vector.extract_strided_slice %226 {offsets = [0, 0], sizes = [8, 32], strides = [1, 1]} : vector<8x128xf32> to vector<8x32xf32>
    %229 = vector.extract_strided_slice %226 {offsets = [0, 32], sizes = [8, 32], strides = [1, 1]} : vector<8x128xf32> to vector<8x32xf32>
    %230 = vector.extract_strided_slice %227 {offsets = [0, 64], sizes = [8, 32], strides = [1, 1]} : vector<8x128xf32> to vector<8x32xf32>
    %231 = vector.extract_strided_slice %226 {offsets = [0, 96], sizes = [8, 32], strides = [1, 1]} : vector<8x128xf32> to vector<8x32xf32>
    %232 = arith.mulf %229, %215 : vector<8x32xf32>
    %233 = arith.mulf %228, %230 : vector<8x32xf32>
    %234 = arith.addf %232, %233 : vector<8x32xf32>
    %235 = math.tanh %234 : vector<8x32xf32>
    %236 = arith.mulf %231, %235 : vector<8x32xf32>
    %cst_52 = arith.constant dense<0.000000e+00> : vector<8x128xf32>
    %237 = tpu.matmul %236, %199, %cst_52 {dimension_numbers = #tpu.dot_dimension_numbers<[1], [0], [0], [1], [0, 0, 1, 1], [], []>} : vector<8x32xf32>, vector<32x128xf32>, vector<8x128xf32> -> vector<8x128xf32>
    %238 = arith.addf %84, %237 : vector<8x128xf32>
    %cst_53 = arith.constant 5.000000e-01 : f32
    %239 = vector.broadcast %cst_53 : f32 to vector<8x128xf32>
    %240 = arith.mulf %239, %238 : vector<8x128xf32>
    %241 = math.tanh %240 : vector<8x128xf32>
    %cst_54 = arith.constant 5.000000e-01 : f32
    %242 = vector.broadcast %cst_54 : f32 to vector<8x128xf32>
    %243 = arith.mulf %242, %241 : vector<8x128xf32>
    %cst_55 = arith.constant 5.000000e-01 : f32
    %244 = vector.broadcast %cst_55 : f32 to vector<8x128xf32>
    %245 = arith.addf %243, %244 : vector<8x128xf32>
    %246 = math.tanh %238 : vector<8x128xf32>
    %247 = vector.extract_strided_slice %245 {offsets = [0, 0], sizes = [8, 32], strides = [1, 1]} : vector<8x128xf32> to vector<8x32xf32>
    %248 = vector.extract_strided_slice %245 {offsets = [0, 32], sizes = [8, 32], strides = [1, 1]} : vector<8x128xf32> to vector<8x32xf32>
    %249 = vector.extract_strided_slice %246 {offsets = [0, 64], sizes = [8, 32], strides = [1, 1]} : vector<8x128xf32> to vector<8x32xf32>
    %250 = vector.extract_strided_slice %245 {offsets = [0, 96], sizes = [8, 32], strides = [1, 1]} : vector<8x128xf32> to vector<8x32xf32>
    %251 = arith.mulf %248, %234 : vector<8x32xf32>
    %252 = arith.mulf %247, %249 : vector<8x32xf32>
    %253 = arith.addf %251, %252 : vector<8x32xf32>
    %254 = math.tanh %253 : vector<8x32xf32>
    %255 = arith.mulf %250, %254 : vector<8x32xf32>
    %cst_56 = arith.constant dense<0.000000e+00> : vector<8x128xf32>
    %256 = tpu.matmul %255, %199, %cst_56 {dimension_numbers = #tpu.dot_dimension_numbers<[1], [0], [0], [1], [0, 0, 1, 1], [], []>} : vector<8x32xf32>, vector<32x128xf32>, vector<8x128xf32> -> vector<8x128xf32>
    %257 = arith.addf %107, %256 : vector<8x128xf32>
    %cst_57 = arith.constant 5.000000e-01 : f32
    %258 = vector.broadcast %cst_57 : f32 to vector<8x128xf32>
    %259 = arith.mulf %258, %257 : vector<8x128xf32>
    %260 = math.tanh %259 : vector<8x128xf32>
    %cst_58 = arith.constant 5.000000e-01 : f32
    %261 = vector.broadcast %cst_58 : f32 to vector<8x128xf32>
    %262 = arith.mulf %261, %260 : vector<8x128xf32>
    %cst_59 = arith.constant 5.000000e-01 : f32
    %263 = vector.broadcast %cst_59 : f32 to vector<8x128xf32>
    %264 = arith.addf %262, %263 : vector<8x128xf32>
    %265 = math.tanh %257 : vector<8x128xf32>
    %266 = vector.extract_strided_slice %264 {offsets = [0, 0], sizes = [8, 32], strides = [1, 1]} : vector<8x128xf32> to vector<8x32xf32>
    %267 = vector.extract_strided_slice %264 {offsets = [0, 32], sizes = [8, 32], strides = [1, 1]} : vector<8x128xf32> to vector<8x32xf32>
    %268 = vector.extract_strided_slice %265 {offsets = [0, 64], sizes = [8, 32], strides = [1, 1]} : vector<8x128xf32> to vector<8x32xf32>
    %269 = vector.extract_strided_slice %264 {offsets = [0, 96], sizes = [8, 32], strides = [1, 1]} : vector<8x128xf32> to vector<8x32xf32>
    %270 = arith.mulf %267, %253 : vector<8x32xf32>
    %271 = arith.mulf %266, %268 : vector<8x32xf32>
    %272 = arith.addf %270, %271 : vector<8x32xf32>
    %273 = math.tanh %272 : vector<8x32xf32>
    %274 = arith.mulf %269, %273 : vector<8x32xf32>
    %cst_60 = arith.constant dense<0.000000e+00> : vector<8x128xf32>
    %275 = tpu.matmul %274, %199, %cst_60 {dimension_numbers = #tpu.dot_dimension_numbers<[1], [0], [0], [1], [0, 0, 1, 1], [], []>} : vector<8x32xf32>, vector<32x128xf32>, vector<8x128xf32> -> vector<8x128xf32>
    %276 = arith.addf %130, %275 : vector<8x128xf32>
    %cst_61 = arith.constant 5.000000e-01 : f32
    %277 = vector.broadcast %cst_61 : f32 to vector<8x128xf32>
    %278 = arith.mulf %277, %276 : vector<8x128xf32>
    %279 = math.tanh %278 : vector<8x128xf32>
    %cst_62 = arith.constant 5.000000e-01 : f32
    %280 = vector.broadcast %cst_62 : f32 to vector<8x128xf32>
    %281 = arith.mulf %280, %279 : vector<8x128xf32>
    %cst_63 = arith.constant 5.000000e-01 : f32
    %282 = vector.broadcast %cst_63 : f32 to vector<8x128xf32>
    %283 = arith.addf %281, %282 : vector<8x128xf32>
    %284 = math.tanh %276 : vector<8x128xf32>
    %285 = vector.extract_strided_slice %283 {offsets = [0, 0], sizes = [8, 32], strides = [1, 1]} : vector<8x128xf32> to vector<8x32xf32>
    %286 = vector.extract_strided_slice %283 {offsets = [0, 32], sizes = [8, 32], strides = [1, 1]} : vector<8x128xf32> to vector<8x32xf32>
    %287 = vector.extract_strided_slice %284 {offsets = [0, 64], sizes = [8, 32], strides = [1, 1]} : vector<8x128xf32> to vector<8x32xf32>
    %288 = vector.extract_strided_slice %283 {offsets = [0, 96], sizes = [8, 32], strides = [1, 1]} : vector<8x128xf32> to vector<8x32xf32>
    %289 = arith.mulf %286, %272 : vector<8x32xf32>
    %290 = arith.mulf %285, %287 : vector<8x32xf32>
    %291 = arith.addf %289, %290 : vector<8x32xf32>
    %292 = math.tanh %291 : vector<8x32xf32>
    %293 = arith.mulf %288, %292 : vector<8x32xf32>
    %cst_64 = arith.constant dense<0.000000e+00> : vector<8x128xf32>
    %294 = tpu.matmul %293, %199, %cst_64 {dimension_numbers = #tpu.dot_dimension_numbers<[1], [0], [0], [1], [0, 0, 1, 1], [], []>} : vector<8x32xf32>, vector<32x128xf32>, vector<8x128xf32> -> vector<8x128xf32>
    %295 = arith.addf %153, %294 : vector<8x128xf32>
    %cst_65 = arith.constant 5.000000e-01 : f32
    %296 = vector.broadcast %cst_65 : f32 to vector<8x128xf32>
    %297 = arith.mulf %296, %295 : vector<8x128xf32>
    %298 = math.tanh %297 : vector<8x128xf32>
    %cst_66 = arith.constant 5.000000e-01 : f32
    %299 = vector.broadcast %cst_66 : f32 to vector<8x128xf32>
    %300 = arith.mulf %299, %298 : vector<8x128xf32>
    %cst_67 = arith.constant 5.000000e-01 : f32
    %301 = vector.broadcast %cst_67 : f32 to vector<8x128xf32>
    %302 = arith.addf %300, %301 : vector<8x128xf32>
    %303 = math.tanh %295 : vector<8x128xf32>
    %304 = vector.extract_strided_slice %302 {offsets = [0, 0], sizes = [8, 32], strides = [1, 1]} : vector<8x128xf32> to vector<8x32xf32>
    %305 = vector.extract_strided_slice %302 {offsets = [0, 32], sizes = [8, 32], strides = [1, 1]} : vector<8x128xf32> to vector<8x32xf32>
    %306 = vector.extract_strided_slice %303 {offsets = [0, 64], sizes = [8, 32], strides = [1, 1]} : vector<8x128xf32> to vector<8x32xf32>
    %307 = vector.extract_strided_slice %302 {offsets = [0, 96], sizes = [8, 32], strides = [1, 1]} : vector<8x128xf32> to vector<8x32xf32>
    %308 = arith.mulf %305, %291 : vector<8x32xf32>
    %309 = arith.mulf %304, %306 : vector<8x32xf32>
    %310 = arith.addf %308, %309 : vector<8x32xf32>
    %311 = math.tanh %310 : vector<8x32xf32>
    %312 = arith.mulf %307, %311 : vector<8x32xf32>
    %cst_68 = arith.constant dense<0.000000e+00> : vector<8x128xf32>
    %313 = tpu.matmul %312, %199, %cst_68 {dimension_numbers = #tpu.dot_dimension_numbers<[1], [0], [0], [1], [0, 0, 1, 1], [], []>} : vector<8x32xf32>, vector<32x128xf32>, vector<8x128xf32> -> vector<8x128xf32>
    %314 = arith.addf %176, %313 : vector<8x128xf32>
    %cst_69 = arith.constant 5.000000e-01 : f32
    %315 = vector.broadcast %cst_69 : f32 to vector<8x128xf32>
    %316 = arith.mulf %315, %314 : vector<8x128xf32>
    %317 = math.tanh %316 : vector<8x128xf32>
    %cst_70 = arith.constant 5.000000e-01 : f32
    %318 = vector.broadcast %cst_70 : f32 to vector<8x128xf32>
    %319 = arith.mulf %318, %317 : vector<8x128xf32>
    %cst_71 = arith.constant 5.000000e-01 : f32
    %320 = vector.broadcast %cst_71 : f32 to vector<8x128xf32>
    %321 = arith.addf %319, %320 : vector<8x128xf32>
    %322 = math.tanh %314 : vector<8x128xf32>
    %323 = vector.extract_strided_slice %321 {offsets = [0, 0], sizes = [8, 32], strides = [1, 1]} : vector<8x128xf32> to vector<8x32xf32>
    %324 = vector.extract_strided_slice %321 {offsets = [0, 32], sizes = [8, 32], strides = [1, 1]} : vector<8x128xf32> to vector<8x32xf32>
    %325 = vector.extract_strided_slice %322 {offsets = [0, 64], sizes = [8, 32], strides = [1, 1]} : vector<8x128xf32> to vector<8x32xf32>
    %326 = vector.extract_strided_slice %321 {offsets = [0, 96], sizes = [8, 32], strides = [1, 1]} : vector<8x128xf32> to vector<8x32xf32>
    %327 = arith.mulf %324, %310 : vector<8x32xf32>
    %328 = arith.mulf %323, %325 : vector<8x32xf32>
    %329 = arith.addf %327, %328 : vector<8x32xf32>
    %330 = math.tanh %329 : vector<8x32xf32>
    %331 = arith.mulf %326, %330 : vector<8x32xf32>
    %cst_72 = arith.constant dense<0.000000e+00> : vector<8x128xf32>
    %332 = tpu.matmul %331, %199, %cst_72 {dimension_numbers = #tpu.dot_dimension_numbers<[1], [0], [0], [1], [0, 0, 1, 1], [], []>} : vector<8x32xf32>, vector<32x128xf32>, vector<8x128xf32> -> vector<8x128xf32>
    %333 = arith.addf %198, %332 : vector<8x128xf32>
    %cst_73 = arith.constant 5.000000e-01 : f32
    %334 = vector.broadcast %cst_73 : f32 to vector<8x128xf32>
    %335 = arith.mulf %334, %333 : vector<8x128xf32>
    %336 = math.tanh %335 : vector<8x128xf32>
    %cst_74 = arith.constant 5.000000e-01 : f32
    %337 = vector.broadcast %cst_74 : f32 to vector<8x128xf32>
    %338 = arith.mulf %337, %336 : vector<8x128xf32>
    %cst_75 = arith.constant 5.000000e-01 : f32
    %339 = vector.broadcast %cst_75 : f32 to vector<8x128xf32>
    %340 = arith.addf %338, %339 : vector<8x128xf32>
    %341 = math.tanh %333 : vector<8x128xf32>
    %342 = vector.extract_strided_slice %340 {offsets = [0, 0], sizes = [8, 32], strides = [1, 1]} : vector<8x128xf32> to vector<8x32xf32>
    %343 = vector.extract_strided_slice %340 {offsets = [0, 32], sizes = [8, 32], strides = [1, 1]} : vector<8x128xf32> to vector<8x32xf32>
    %344 = vector.extract_strided_slice %341 {offsets = [0, 64], sizes = [8, 32], strides = [1, 1]} : vector<8x128xf32> to vector<8x32xf32>
    %345 = vector.extract_strided_slice %340 {offsets = [0, 96], sizes = [8, 32], strides = [1, 1]} : vector<8x128xf32> to vector<8x32xf32>
    %346 = arith.mulf %343, %329 : vector<8x32xf32>
    %347 = arith.mulf %342, %344 : vector<8x32xf32>
    %348 = arith.addf %346, %347 : vector<8x32xf32>
    %349 = math.tanh %348 : vector<8x32xf32>
    %350 = arith.mulf %345, %349 : vector<8x32xf32>
    %c0_76 = arith.constant 0 : index
    %c0_77 = arith.constant 0 : index
    %351 = vector.load %arg6[%c0_76, %c0_77] : memref<32x4xf32, #tpu.memory_space<vmem>>, vector<32x4xf32>
    %cst_78 = arith.constant dense<0.000000e+00> : vector<8x4xf32>
    %352 = tpu.matmul %350, %351, %cst_78 {dimension_numbers = #tpu.dot_dimension_numbers<[1], [0], [0], [1], [0, 0, 1, 1], [], []>} : vector<8x32xf32>, vector<32x4xf32>, vector<8x4xf32> -> vector<8x4xf32>
    %c0_79 = arith.constant 0 : index
    %c0_80 = arith.constant 0 : index
    %353 = vector.load %arg7[%c0_79, %c0_80] : memref<1x4xf32, #tpu.memory_space<vmem>>, vector<1x4xf32>
    %354 = vector.broadcast %353 : vector<1x4xf32> to vector<8x4xf32>
    %355 = arith.addf %352, %354 : vector<8x4xf32>
    %cst_81 = arith.constant 5.000000e-01 : f32
    %356 = vector.broadcast %cst_81 : f32 to vector<8x4xf32>
    %357 = arith.mulf %356, %355 : vector<8x4xf32>
    %358 = math.tanh %357 : vector<8x4xf32>
    %cst_82 = arith.constant 5.000000e-01 : f32
    %359 = vector.broadcast %cst_82 : f32 to vector<8x4xf32>
    %360 = arith.mulf %359, %358 : vector<8x4xf32>
    %cst_83 = arith.constant 5.000000e-01 : f32
    %361 = vector.broadcast %cst_83 : f32 to vector<8x4xf32>
    %362 = arith.addf %360, %361 : vector<8x4xf32>
    %c0_84 = arith.constant 0 : index
    %c0_85 = arith.constant 0 : index
    %363 = vector.load %arg8[%c0_84, %c0_85] : memref<8x4xf32, #tpu.memory_space<vmem>>, vector<8x4xf32>
    tpu.vector_store %arg8[%c0_84, %c0_85], %362 {strides = array<i32>} : memref<8x4xf32, #tpu.memory_space<vmem>>, vector<8x4xf32>,
    return
  }
}

</mosaic_0001>

<bundles_post_ra>
// kernel: tpu_custom_call.1
= control target key start
LH: loop header
LB: loop body
LE: loop exit
PB: predicated region body
PF: predicated region fallthrough
CT: control target
= control target key end

     0   :  { %vm46_vm0 = vcmask 130048   ;;  %s2199_s15 = smov 32   ;;  %v2200_v22 = vmov 0.0   ;;  %vm210_vm1 = vcmask 261120   ;;  %vm2202_vm2 = vmmov 0   ;;  %s2581_s1 = inlined_call_operand.vmem [shape: f32[16,128], index: 1, kind: input, shape index: {}]   ;;  %s2582_s0 = inlined_call_operand.vmem [shape: f32[64,16], index: 0, kind: input, shape index: {}]   ;;  %s2583_s2 = inlined_call_operand.vmem [shape: f32[1,128], index: 2, kind: input, shape index: {}]   ;;  %s2584_s3 = inlined_call_operand.vmem [shape: f32[32,256], index: 3, kind: input, shape index: {}]   ;;  %s2585_s4 = inlined_call_operand.vmem [shape: f32[1,128], index: 4, kind: input, shape index: {}]   ;;  %s2586_s5 = inlined_call_operand.vmem [shape: f32[32,128], index: 5, kind: input, shape index: {}]   ;;  %s2587_s6 = inlined_call_operand.vmem [shape: f32[32,4], index: 6, kind: input, shape index: {}]   ;;  %s2588_s7 = inlined_call_operand.vmem [shape: f32[1,4], index: 7, kind: input, shape index: {}]   ;;  %s2589_s8 = inlined_call_operand.vmem [shape: f32[8,4], index: 8, kind: output, shape index: {}]  }
   0x1   :  { %v37_v0 = vld [vmem:[%s2581_s1] sm:$0xff]  ;;  %v38_v1 = vld [vmem:[%s2581_s1 + $0x8] sm:$0xff]  ;;  %s2198_s1 = smov 64   ;;  %v179_v20 = vld [vmem:[%s2584_s3 + $0x18] sm:$0xff]  ;;  %277 = vmatprep.mubr.f32.mxu1 %v2200_v22  ;;  %vm1792_vm3 = vcmask 31744  }
   0x2   :  { %v29_v2 = vld [vmem:[%s2582_s0] sm:$0xff]  ;;  %v1979_v3 = vpack.c.bf16 %v38_v1, %v37_v0  ;;  %v30_v4 = vld [vmem:[%s2582_s0 + $0x8] sm:$0xff]  ;;  %v178_v24 = vld [vmem:[%s2584_s3 + $0x10] sm:$0xff] }
   0x3   :  { %1879 = vmatprep.mubr.msk.f32.mxu0 %vm46_vm0, %v29_v2  ;;  %v2265_v5 = vld [vmem:[%s2583_s2] ss:$0 sm:$0xff]  ;;  %v177_v19 = vld [vmem:[%s2584_s3 + $0x8] sm:$0xff]  ;;  %v183_v26 = vld [vmem:[%s2584_s3 + $0x38] sm:$0xff] }
   0x4   :  { %1980 = vmatprep.subr.bf16.mxu0 %v1979_v3  ;;  %v176_v21 = vld [vmem:[%s2584_s3] sm:$0xff]  ;;  %v2280_v23 = vpack.c.bf16 %v179_v20, %v177_v19  ;;  %v181_v25 = vld [vmem:[%s2584_s3 + $0x28] sm:$0xff]  ;;  %v182_v30 = vld [vmem:[%s2584_s3 + $0x30] sm:$0xff] }
   0x5   :  { %1982 = vmatpush3.bf16.msra.mxu0 %v1979_v3  ;;  %v2291_v27 = vpack.c.bf16 %v178_v24, %v176_v21  ;;  %v2293_v28 = vpack.c.bf16 %v183_v26, %v181_v25  ;;  %v180_v29 = vld [vmem:[%s2584_s3 + $0x20] sm:$0xff]  ;;  %v31_v50 = vld [vmem:[%s2582_s0 + $0x10] sm:$0xff]  ;;  %v32_v51 = vld [vmem:[%s2582_s0 + $0x18] sm:$0xff] }
   0x6   :  { %1984 = vmatprep.subr.bf16.mxu1 %v2280_v23  ;;  %2000 = vmatprep.subr.bf16.mxu0 %v2280_v23  ;;  %v2304_v31 = vpack.c.bf16 %v182_v30, %v180_v29 }
   0x7   :  { %1986 = vmatpush1.bf16.msra.mxu1 %v2291_v27 }
   0x8   :  { %1880 = vmatmul.mubr.msk.f32.vlgmr.msra.gmra.mrb[0].mxu0 %vm46_vm0, %v30_v4  ;;  %1988 = vmatprep.subr.bf16.mxu1 %v2293_v28 }
   0x9   :  { %2002 = vmatpush1.bf16.msra.mxu0 %v2291_v27  ;;  %1882 = vmatprep.mubr.msk.f32.mxu0 %vm46_vm0, %v31_v50 }
   0xa   :  { %2004 = vmatprep.subr.bf16.mxu0 %v2293_v28 }
   0xb   :  { %1990 = vmatpush1.bf16.msra.mxu1 %v2304_v31 }
   0xc   :  { %1992 = vmatprep.subr.bf16.mxu1 %v2280_v23  ;;  %1883 = vmatmul.mubr.msk.f32.gmra.mrb[2].mxu0 %vm46_vm0, %v32_v51 }
   0xd   :  { %2006 = vmatpush1.bf16.msra.mxu0 %v2304_v31 }
   0xe   :  { %2016 = vmatprep.subr.bf16.mxu0 %v2280_v23 }
  0xdb   :  { %v1881_v6 = vpop.f32.mrb[0].mxu0 }
  0xdc   :  { %v137_v7 = vpop.f32.mrb[1].mxu0  ;;  %v143_v36 = vadd.f32 %v1881_v6, %v2265_v5 }
  0xdd   :  { %v138_v8 = vadd.f32 %v2265_v5, %v137_v7 }
  0xdf   :  { %2100 = vtanh.f32 %v138_v8  ;;  %v185_v10 = vmul.f32 0.5, %v138_v8  ;;  %v1884_v55 = vpop.f32.mrb[2].mxu0 }
  0xe0   :  { %v147_v56 = vpop.f32.mrb[3].mxu0  ;;  %v153_v21 = vadd.f32 %v1884_v55, %v2265_v5 }
  0xe1   :  { %2102 = vtanh.f32 %v185_v10  ;;  %v148_v58 = vadd.f32 %v2265_v5, %v147_v56  ;;  %v34_v10 = vld [vmem:[%s2582_s0 + $0x28] sm:$0xff] }
  0xe9   :  { %v2101_v9 = vpop.eup %2100 }
  0xea   :  { %192 = vrot.lane.b32.xlu0 %v2101_v9, %s2198_s1  ;;  %v33_v9 = vld [vmem:[%s2582_s0 + $0x20] sm:$0xff] }
  0xeb   :  { %v2103_v11 = vpop.eup %2102  ;;  %1885 = vmatprep.mubr.msk.f32.mxu0 %vm46_vm0, %v33_v9 }
  0xec   :  { %v187_v12 = vmul.f32 0.5, %v2103_v11  ;;  %v35_v11 = vld [vmem:[%s2582_s0 + $0x30] sm:$0xff]  ;;  %1886 = vmatmul.mubr.msk.f32.gmra.mrb[4].mxu0 %vm46_vm0, %v34_v10 }
  0xed   :  { %1888 = vmatprep.mubr.msk.f32.mxu0 %vm46_vm0, %v35_v11 }
  0xee   :  { %v188_v13 = vadd.f32 0.5, %v187_v12  ;;  %v36_v12 = vld [vmem:[%s2582_s0 + $0x38] sm:$0xff] }
  0xf0   :  { %v190_v16 = vmul.f32 0.0, %v188_v13  ;;  %1889 = vmatmul.mubr.msk.f32.gmra.mrb[6].mxu0 %vm46_vm0, %v36_v12 }
  0xf1   :  { %483 = vmatprep.mubr.f32.mxu0 %v2200_v22 }
 0x15c   :  { %v193_v14 = vpop.permute.xlu0 %192 }
 0x15d   :  { %v195_v15 = vmul.f32 %v193_v14, %v188_v13 }
 0x15f   :  { %197 = vrot.lane.b32.xlu0 %v195_v15, %s2199_s15 }
 0x1d1   :  { %v198_v17 = vpop.permute.xlu0 %197 }
 0x1d2   :  { %v200_v18 = vadd.f32 %v198_v17, %v190_v16  ;;  %v2366_v16 = vpop.f32.mrb[4].mxu0 }
 0x1d3   :  { %v157_v17 = vpop.f32.mrb[5].mxu0 }
 0x1d4   :  { %2104 = vtanh.f32 %v200_v18 }
 0x1de   :  { %v2105_v32 = vpop.eup %2104 }
 0x1df   :  { %203 = vrot.lane.b32.xlu1 %v2105_v32, %s2198_s1 }
 0x251   :  { %v204_v33 = vpop.permute.xlu1 %203 }
 0x252   :  { %v206_v34 = vmul.f32 %v204_v33, %v188_v13 }
 0x254   :  { %208 = vrot.lane.b32.xlu1 %v206_v34, %s2199_s15 }
 0x2c6   :  { %v209_v35 = vpop.permute.xlu1 %208 }
 0x2c7   :  { %1807 = vmatmul.mubr.msk.f32.vlgmr.msra.gmra.mrb[0].mxu1 %vm210_vm1, %v209_v35 }
 0x2c8   :  { %1994 = vmatpush1.bf16.msra.mxu1 %v2291_v27  ;;  %383 = vmatprep.mubr.f32.mxu1 %v2200_v22 }
 0x2c9   :  { %1996 = vmatprep.subr.bf16.mxu1 %v2293_v28 }
 0x2cc   :  { %1998 = vmatpush1.bf16.msra.mxu1 %v2304_v31 }
 0x2cd   :  { %2008 = vmatprep.subr.bf16.mxu1 %v2280_v23 }
 0x39a   :  { %v279_v37 = vpop.f32.mrb[0].mxu1 }
 0x39b   :  { %v291_v38 = vadd.f32 %v279_v37, %v143_v36  ;;  %v2322_v39 = vpop.f32.mrb[1].mxu1 }
 0x39d   :  { %2106 = vtanh.f32 %v291_v38  ;;  %v292_v41 = vmul.f32 0.5, %v291_v38 }
 0x39f   :  { %2108 = vtanh.f32 %v292_v41 }
 0x3a7   :  { %v2107_v40 = vpop.eup %2106 }
 0x3a8   :  { %299 = vrot.lane.b32.xlu0 %v2107_v40, %s2198_s1 }
 0x3a9   :  { %v2109_v42 = vpop.eup %2108 }
 0x3aa   :  { %v294_v43 = vmul.f32 0.5, %v2109_v42 }
 0x3ac   :  { %v295_v44 = vadd.f32 0.5, %v294_v43 }
 0x3ae   :  { %v297_v47 = vmul.f32 %v295_v44, %v200_v18  ;;  %v2368_v18 = vpop.f32.mrb[6].mxu0 }
 0x3af   :  { %v2370_v19 = vpop.f32.mrb[7].mxu0 }
 0x41a   :  { %v300_v45 = vpop.permute.xlu0 %299 }
 0x41b   :  { %v302_v46 = vmul.f32 %v300_v45, %v295_v44  ;;  %v158_v45 = vadd.f32 %v2265_v5, %v157_v17 }
 0x41d   :  { %304 = vrot.lane.b32.xlu1 %v302_v46, %s2199_s15 }
 0x48f   :  { %v305_v48 = vpop.permute.xlu1 %304 }
 0x490   :  { %v307_v49 = vadd.f32 %v305_v48, %v297_v47 }
 0x492   :  { %2110 = vtanh.f32 %v307_v49 }
 0x49c   :  { %v2111_v52 = vpop.eup %2110 }
 0x49d   :  { %310 = vrot.lane.b32.xlu0 %v2111_v52, %s2198_s1 }
 0x50f   :  { %v311_v53 = vpop.permute.xlu0 %310 }
 0x510   :  { %v313_v54 = vmul.f32 %v311_v53, %v295_v44 }
 0x512   :  { %315 = vrot.lane.b32.xlu1 %v313_v54, %s2199_s15 }
 0x584   :  { %v316_v57 = vpop.permute.xlu1 %315 }
 0x585   :  { %1809 = vmatmul.mubr.msk.f32.vlgmr.msra.gmra.mrb[2].mxu1 %vm210_vm1, %v316_v57 }
 0x586   :  { %2010 = vmatpush1.bf16.msra.mxu1 %v2291_v27  ;;  %583 = vmatprep.mubr.f32.mxu1 %v2200_v22 }
 0x587   :  { %2012 = vmatprep.subr.bf16.mxu1 %v2293_v28 }
 0x58a   :  { %2014 = vmatpush1.bf16.msra.mxu1 %v2304_v31 }
 0x58b   :  { %2024 = vmatprep.subr.bf16.mxu1 %v2280_v23 }
 0x658   :  { %v385_v59 = vpop.f32.mrb[2].mxu1 }
 0x659   :  { %v391_v60 = vadd.f32 %v385_v59, %v148_v58  ;;  %v2343_v61 = vpop.f32.mrb[3].mxu1 }
 0x65b   :  { %2112 = vtanh.f32 %v391_v60  ;;  %v392_v63 = vmul.f32 0.5, %v391_v60 }
 0x65d   :  { %2114 = vtanh.f32 %v392_v63  ;;  %v163_v63 = vadd.f32 %v2366_v16, %v2265_v5 }
 0x665   :  { %v2113_v62 = vpop.eup %2112 }
 0x666   :  { %399 = vrot.lane.b32.xlu0 %v2113_v62, %s2198_s1 }
 0x667   :  { %v2115_v0 = vpop.eup %2114 }
 0x668   :  { %v394_v1 = vmul.f32 0.5, %v2115_v0 }
 0x66a   :  { %v395_v2 = vadd.f32 0.5, %v394_v1 }
 0x66c   :  { %v397_v6 = vmul.f32 %v395_v2, %v307_v49 }
 0x6d8   :  { %v400_v3 = vpop.permute.xlu0 %399 }
 0x6d9   :  { %v402_v4 = vmul.f32 %v400_v3, %v395_v2 }
 0x6db   :  { %404 = vrot.lane.b32.xlu1 %v402_v4, %s2199_s15 }
 0x74d   :  { %v405_v7 = vpop.permute.xlu1 %404 }
 0x74e   :  { %v407_v8 = vadd.f32 %v405_v7, %v397_v6 }
 0x750   :  { %2116 = vtanh.f32 %v407_v8 }
 0x75a   :  { %v2117_v13 = vpop.eup %2116 }
 0x75b   :  { %410 = vrot.lane.b32.xlu0 %v2117_v13, %s2198_s1 }
 0x7cd   :  { %v411_v14 = vpop.permute.xlu0 %410 }
 0x7ce   :  { %v413_v15 = vmul.f32 %v411_v14, %v395_v2 }
 0x7d0   :  { %415 = vrot.lane.b32.xlu1 %v413_v15, %s2199_s15  ;;  %v2413_v15 = vld [vmem:[%s2585_s4] ss:$0 sm:$0xff] }
 0x7d1   :  { %v290_v16 = vadd.f32 %v2413_v15, %v2322_v39 }
 0x842   :  { %v416_v20 = vpop.permute.xlu1 %415 }
 0x843   :  { %1810 = vmatmul.mubr.msk.f32.vlgmr.msra.gmra.mrb[8].mxu0 %vm210_vm1, %v416_v20 }
 0x844   :  { %2018 = vmatpush1.bf16.msra.mxu0 %v2291_v27  ;;  %683 = vmatprep.mubr.f32.mxu0 %v2200_v22 }
 0x845   :  { %2020 = vmatprep.subr.bf16.mxu0 %v2293_v28 }
 0x848   :  { %2022 = vmatpush1.bf16.msra.mxu0 %v2304_v31 }
 0x849   :  { %2032 = vmatprep.subr.bf16.mxu0 %v2280_v23 }
 0x916   :  { %v485_v24 = vpop.f32.mrb[8].mxu0 }
 0x917   :  { %v491_v25 = vadd.f32 %v485_v24, %v153_v21  ;;  %v2379_v26 = vpop.f32.mrb[9].mxu0  ;;  %v994_v24 = vmul.f32 0.5, %v290_v16 }
 0x919   :  { %2118 = vtanh.f32 %v491_v25  ;;  %v492_v30 = vmul.f32 0.5, %v491_v25 }
 0x91b   :  { %2120 = vtanh.f32 %v492_v30 }
 0x923   :  { %v2119_v29 = vpop.eup %2118 }
 0x924   :  { %499 = vrot.lane.b32.xlu0 %v2119_v29, %s2198_s1 }
 0x925   :  { %v2121_v32 = vpop.eup %2120 }
 0x926   :  { %v494_v33 = vmul.f32 0.5, %v2121_v32 }
 0x928   :  { %v495_v34 = vadd.f32 0.5, %v494_v33 }
 0x92a   :  { %v497_v37 = vmul.f32 %v495_v34, %v407_v8 }
 0x996   :  { %v500_v35 = vpop.permute.xlu0 %499 }
 0x997   :  { %v502_v36 = vmul.f32 %v500_v35, %v495_v34 }
 0x999   :  { %504 = vrot.lane.b32.xlu1 %v502_v36, %s2199_s15 }
 0xa0b   :  { %v505_v38 = vpop.permute.xlu1 %504 }
 0xa0c   :  { %v507_v40 = vadd.f32 %v505_v38, %v497_v37 }
 0xa0e   :  { %2122 = vtanh.f32 %v507_v40 }
 0xa18   :  { %v2123_v41 = vpop.eup %2122 }
 0xa19   :  { %510 = vrot.lane.b32.xlu0 %v2123_v41, %s2198_s1 }
 0xa8b   :  { %v511_v42 = vpop.permute.xlu0 %510 }
 0xa8c   :  { %v513_v43 = vmul.f32 %v511_v42, %v495_v34 }
 0xa8e   :  { %515 = vrot.lane.b32.xlu1 %v513_v43, %s2199_s15 }
 0xb00   :  { %v516_v44 = vpop.permute.xlu1 %515 }
 0xb01   :  { %1811 = vmatmul.mubr.msk.f32.vlgmr.msra.gmra.mrb[4].mxu1 %vm210_vm1, %v516_v44 }
 0xb02   :  { %2026 = vmatpush1.bf16.msra.mxu1 %v2291_v27  ;;  %783 = vmatprep.mubr.f32.mxu1 %v2200_v22 }
 0xb03   :  { %2028 = vmatprep.subr.bf16.mxu1 %v2293_v28 }
 0xb06   :  { %2030 = vmatpush1.bf16.msra.mxu1 %v2304_v31 }
 0xb07   :  { %2040 = vmatprep.subr.bf16.mxu1 %v2280_v23 }
 0xbd4   :  { %v585_v46 = vpop.f32.mrb[4].mxu1 }
 0xbd5   :  { %v591_v47 = vadd.f32 %v585_v46, %v158_v45  ;;  %v2392_v48 = vpop.f32.mrb[5].mxu1 }
 0xbd7   :  { %2124 = vtanh.f32 %v591_v47  ;;  %v592_v50 = vmul.f32 0.5, %v591_v47 }
 0xbd9   :  { %2126 = vtanh.f32 %v592_v50 }
 0xbe1   :  { %v2125_v49 = vpop.eup %2124 }
 0xbe2   :  { %599 = vrot.lane.b32.xlu0 %v2125_v49, %s2198_s1 }
 0xbe3   :  { %v2127_v51 = vpop.eup %2126 }
 0xbe4   :  { %v594_v52 = vmul.f32 0.5, %v2127_v51 }
 0xbe6   :  { %v595_v53 = vadd.f32 0.5, %v594_v52  ;;  %v2201_v52 = vmov 0.0|0.0  }
 0xbe8   :  { %v597_v23 = vmul.f32 %v595_v53, %v507_v40 }
 0xc54   :  { %v600_v54 = vpop.permute.xlu0 %599 }
 0xc55   :  { %v602_v55 = vmul.f32 %v600_v54, %v595_v53 }
 0xc57   :  { %604 = vrot.lane.b32.xlu1 %v602_v55, %s2199_s15 }
 0xcc9   :  { %v605_v56 = vpop.permute.xlu1 %604 }
 0xcca   :  { %v607_v57 = vadd.f32 %v605_v56, %v597_v23  ;;  %v990_v23 = vld [vmem:[%s2586_s5] sm:$0xff]  ;;  %v991_v56 = vld [vmem:[%s2586_s5 + $0x8] sm:$0xff] }
 0xccc   :  { %2128 = vtanh.f32 %v607_v57 }
 0xcd6   :  { %v2129_v58 = vpop.eup %2128 }
 0xcd7   :  { %610 = vrot.lane.b32.xlu0 %v2129_v58, %s2198_s1  ;;  %v992_v58 = vld [vmem:[%s2586_s5 + $0x10] sm:$0xff] }
 0xd49   :  { %v611_v59 = vpop.permute.xlu0 %610 }
 0xd4a   :  { %v613_v60 = vmul.f32 %v611_v59, %v595_v53  ;;  %v993_v59 = vld [vmem:[%s2586_s5 + $0x18] sm:$0xff] }
 0xd4c   :  { %615 = vrot.lane.b32.xlu1 %v613_v60, %s2199_s15 }
 0xdbe   :  { %v616_v62 = vpop.permute.xlu1 %615 }
 0xdbf   :  { %1812 = vmatmul.mubr.msk.f32.vlgmr.msra.gmra.mrb[10].mxu0 %vm210_vm1, %v616_v62  ;;  %v2456_v62 = vpack.c.bf16 %v993_v59, %v992_v58 }
 0xdc0   :  { %2034 = vmatpush1.bf16.msra.mxu0 %v2291_v27  ;;  %883 = vmatprep.mubr.f32.mxu0 %v2200_v22 }
 0xdc1   :  { %2036 = vmatprep.subr.bf16.mxu0 %v2293_v28 }
 0xdc4   :  { %2038 = vmatpush1.bf16.msra.mxu0 %v2304_v31 }
 0xdc5   :  { %2047 = vmatprep.subr.bf16.mxu0 %v2201_v52 }
 0xe92   :  { %v685_v0 = vpop.f32.mrb[10].mxu0 }
 0xe93   :  { %v691_v1 = vadd.f32 %v685_v0, %v163_v63  ;;  %v2405_v2 = vpop.f32.mrb[11].mxu0  ;;  %v173_v0 = vadd.f32 %v2368_v18, %v2265_v5 }
 0xe95   :  { %2130 = vtanh.f32 %v691_v1  ;;  %v692_v4 = vmul.f32 0.5, %v691_v1 }
 0xe97   :  { %2132 = vtanh.f32 %v692_v4 }
 0xe9f   :  { %v2131_v3 = vpop.eup %2130 }
 0xea0   :  { %699 = vrot.lane.b32.xlu0 %v2131_v3, %s2198_s1 }
 0xea1   :  { %v2133_v6 = vpop.eup %2132 }
 0xea2   :  { %v694_v7 = vmul.f32 0.5, %v2133_v6  ;;  %v390_v6 = vadd.f32 %v2413_v15, %v2343_v61 }
 0xea4   :  { %v695_v8 = vadd.f32 0.5, %v694_v7 }
 0xea6   :  { %v697_v11 = vmul.f32 %v695_v8, %v607_v57  ;;  %v2446_v57 = vpack.c.bf16 %v991_v56, %v990_v23 }
 0xf12   :  { %v700_v9 = vpop.permute.xlu0 %699 }
 0xf13   :  { %v702_v10 = vmul.f32 %v700_v9, %v695_v8 }
 0xf15   :  { %704 = vrot.lane.b32.xlu1 %v702_v10, %s2199_s15 }
 0xf87   :  { %v705_v12 = vpop.permute.xlu1 %704 }
 0xf88   :  { %v707_v13 = vadd.f32 %v705_v12, %v697_v11 }
 0xf8a   :  { %2134 = vtanh.f32 %v707_v13 }
 0xf8b   :  { %2136 = vtanh.f32 %v290_v16 }
 0xf8c   :  { %2138 = vtanh.f32 %v994_v24 }
 0xf94   :  { %v2135_v14 = vpop.eup %2134 }
 0xf95   :  { %710 = vrot.lane.b32.xlu0 %v2135_v14, %s2198_s1  ;;  %v2137_v21 = vpop.eup %2136 }
 0xf96   :  { %v2139_v25 = vpop.eup %2138 }
 0xf97   :  { %v996_v29 = vmul.f32 0.5, %v2139_v25 }
 0xf99   :  { %v997_v39 = vadd.f32 0.5, %v996_v29 }
 0xf9b   :  { %v999_v34 = vmul.f32 0.0, %v997_v39 }
0x1007   :  { %v711_v17 = vpop.permute.xlu0 %710 }
0x1008   :  { %v713_v20 = vmul.f32 %v711_v17, %v695_v8 }
0x100a   :  { %715 = vrot.lane.b32.xlu1 %v713_v20, %s2199_s15 }
0x100e   :  { %1001 = vrot.lane.b32.xlu1 %v2137_v21, %s2198_s1 }
0x107c   :  { %v716_v30 = vpop.permute.xlu1 %715 }
0x107d   :  { %1813 = vmatmul.mubr.msk.f32.vlgmr.msra.gmra.mrb[6].mxu1 %vm210_vm1, %v716_v30 }
0x107e   :  { %2042 = vmatpush1.bf16.msra.mxu1 %v2291_v27  ;;  %983 = vmatprep.mubr.f32.mxu1 %v2200_v22  ;;  %v168_v27 = vadd.f32 %v2265_v5, %v2370_v19 }
0x107f   :  { %2044 = vmatprep.subr.bf16.mxu1 %v2293_v28 }
0x1080   :  { %v1002_v32 = vpop.permute.xlu1 %1001 }
0x1081   :  { %v1004_v33 = vmul.f32 %v1002_v32, %v997_v39 }
0x1082   :  { %2046 = vmatpush1.bf16.msra.mxu1 %v2304_v31 }
0x1083   :  { %1006 = vrot.lane.b32.xlu1 %v1004_v33, %s2199_s15  ;;  %2053 = vmatprep.subr.bf16.mxu1 %v2201_v52 }
0x10f5   :  { %v1007_v35 = vpop.permute.xlu1 %1006 }
0x10f6   :  { %v2425_v36 = vadd.f32 %v1007_v35, %v999_v34 }
0x10f8   :  { %2140 = vtanh.f32 %v2425_v36 }
0x1102   :  { %v2141_v37 = vpop.eup %2140 }
0x1103   :  { %1012 = vrot.lane.b32.xlu1 %v2141_v37, %s2198_s1 }
0x1150   :  { %v785_v38 = vpop.f32.mrb[6].mxu1 }
0x1151   :  { %v791_v28 = vadd.f32 %v785_v38, %v168_v27  ;;  %v2431_v40 = vpop.f32.mrb[7].mxu1 }
0x1153   :  { %2142 = vtanh.f32 %v791_v28  ;;  %v792_v43 = vmul.f32 0.5, %v791_v28 }
0x1155   :  { %2144 = vtanh.f32 %v792_v43 }
0x115d   :  { %v2143_v31 = vpop.eup %2142 }
0x115e   :  { %799 = vrot.lane.b32.xlu0 %v2143_v31, %s2198_s1 }
0x115f   :  { %v2145_v44 = vpop.eup %2144 }
0x1160   :  { %v794_v45 = vmul.f32 0.5, %v2145_v44  ;;  %v490_v44 = vadd.f32 %v2413_v15, %v2379_v26 }
0x1162   :  { %v795_v46 = vadd.f32 0.5, %v794_v45 }
0x1164   :  { %v797_v19 = vmul.f32 %v795_v46, %v707_v13 }
0x1175   :  { %v1013_v41 = vpop.permute.xlu1 %1012 }
0x1176   :  { %v1015_v42 = vmul.f32 %v1013_v41, %v997_v39 }
0x1178   :  { %1017 = vrot.lane.b32.xlu1 %v1015_v42, %s2199_s15 }
0x11d0   :  { %v800_v47 = vpop.permute.xlu0 %799 }
0x11d1   :  { %v802_v49 = vmul.f32 %v800_v47, %v795_v46 }
0x11d3   :  { %804 = vrot.lane.b32.xlu0 %v802_v49, %s2199_s15 }
0x11ea   :  { %v1018_v63 = vpop.permute.xlu1 %1017 }
0x1245   :  { %v805_v50 = vpop.permute.xlu0 %804 }
0x1246   :  { %v807_v51 = vadd.f32 %v805_v50, %v797_v19 }
0x1248   :  { %2146 = vtanh.f32 %v807_v51 }
0x1252   :  { %v2147_v53 = vpop.eup %2146 }
0x1253   :  { %810 = vrot.lane.b32.xlu0 %v2147_v53, %s2198_s1 }
0x12c5   :  { %v811_v54 = vpop.permute.xlu0 %810 }
0x12c6   :  { %v813_v55 = vmul.f32 %v811_v54, %v795_v46 }
0x12c8   :  { %815 = vrot.lane.b32.xlu0 %v813_v55, %s2199_s15 }
0x133a   :  { %v816_v60 = vpop.permute.xlu0 %815 }
0x133b   :  { %1814 = vmatmul.mubr.msk.f32.vlgmr.msra.gmra.mrb[12].mxu0 %vm210_vm1, %v816_v60 }
0x133c   :  { %2049 = vmatpush3.bf16.msra.mxu0 %v2446_v57  ;;  %1899 = vmatprep.mubr.msk.f32.mxu0 %vm2202_vm2, %v2200_v22 }
0x133d   :  { %2050 = vmatprep.subr.bf16.mxu0 %v2201_v52 }
0x1340   :  { %2052 = vmatpush3.bf16.msra.mxu0 %v2456_v62 }
0x1341   :  { %2059 = vmatprep.subr.bf16.mxu0 %v2201_v52 }
0x1343   :  { %1900 = vmatmul.mubr.msk.f32.vlgmr.msra.gmra.mrb[14].mxu0 %vm210_vm1, %v1018_v63 }
0x1344   :  { %2061 = vmatpush3.bf16.msra.mxu0 %v2446_v57  ;;  %1921 = vmatprep.mubr.msk.f32.mxu0 %vm2202_vm2, %v2200_v22 }
0x1345   :  { %2062 = vmatprep.subr.bf16.mxu0 %v2201_v52 }
0x1348   :  { %2064 = vmatpush3.bf16.msra.mxu0 %v2456_v62 }
0x1349   :  { %2071 = vmatprep.subr.bf16.mxu0 %v2201_v52 }
0x140e   :  { %v885_v1 = vpop.f32.mrb[12].mxu0 }
0x140f   :  { %v891_v3 = vadd.f32 %v885_v1, %v173_v0  ;;  %v2472_v4 = vpop.f32.mrb[13].mxu0  ;;  %v590_v0 = vadd.f32 %v2413_v15, %v2392_v48 }
0x1411   :  { %2148 = vtanh.f32 %v891_v3  ;;  %v892_v12 = vmul.f32 0.5, %v891_v3 }
0x1416   :  { %v1087_v7 = vpop.f32.mrb[14].mxu0 }
0x1417   :  { %v1091_v8 = vadd.f32 %v1087_v7, %v390_v6  ;;  %v1901_v9 = vpop.f32.mrb[15].mxu0 }
0x1419   :  { %2150 = vtanh.f32 %v1091_v8  ;;  %v1092_v5 = vmul.f32 0.5, %v1091_v8 }
0x141a   :  { %2152 = vtanh.f32 %v892_v12 }
0x141b   :  { %v2149_v10 = vpop.eup %2148  ;;  %2154 = vtanh.f32 %v1092_v5 }
0x141c   :  { %899 = vrot.lane.b32.xlu0 %v2149_v10, %s2198_s1 }
0x1423   :  { %v2151_v11 = vpop.eup %2150 }
0x1424   :  { %1099 = vrot.lane.b32.xlu1 %v2151_v11, %s2198_s1  ;;  %v2153_v18 = vpop.eup %2152 }
0x1425   :  { %v894_v13 = vmul.f32 0.5, %v2153_v18  ;;  %v2155_v16 = vpop.eup %2154 }
0x1426   :  { %v1094_v20 = vmul.f32 0.5, %v2155_v16 }
0x1427   :  { %v895_v14 = vadd.f32 0.5, %v894_v13 }
0x1428   :  { %v1095_v21 = vadd.f32 0.5, %v1094_v20  ;;  %v690_v20 = vadd.f32 %v2413_v15, %v2405_v2 }
0x1429   :  { %v897_v29 = vmul.f32 %v895_v14, %v807_v51 }
0x142a   :  { %v1097_v32 = vmul.f32 %v1095_v21, %v2425_v36 }
0x148e   :  { %v900_v17 = vpop.permute.xlu0 %899 }
0x148f   :  { %v902_v61 = vmul.f32 %v900_v17, %v895_v14 }
0x1491   :  { %904 = vrot.lane.b32.xlu0 %v902_v61, %s2199_s15 }
0x1496   :  { %v1100_v24 = vpop.permute.xlu1 %1099 }
0x1497   :  { %v1102_v25 = vmul.f32 %v1100_v24, %v1095_v21 }
0x1499   :  { %1104 = vrot.lane.b32.xlu1 %v1102_v25, %s2199_s15 }
0x1503   :  { %v905_v30 = vpop.permute.xlu0 %904 }
0x1504   :  { %v907_v39 = vadd.f32 %v905_v30, %v897_v29 }
0x1506   :  { %2156 = vtanh.f32 %v907_v39 }
0x150b   :  { %v1105_v33 = vpop.permute.xlu1 %1104 }
0x150c   :  { %v1107_v34 = vadd.f32 %v1105_v33, %v1097_v32 }
0x150e   :  { %2158 = vtanh.f32 %v1107_v34 }
0x1510   :  { %v2157_v35 = vpop.eup %2156 }
0x1511   :  { %910 = vrot.lane.b32.xlu0 %v2157_v35, %s2198_s1 }
0x1518   :  { %v2159_v37 = vpop.eup %2158 }
0x1519   :  { %1110 = vrot.lane.b32.xlu1 %v2159_v37, %s2198_s1 }
0x1583   :  { %v911_v27 = vpop.permute.xlu0 %910 }
0x1584   :  { %v913_v38 = vmul.f32 %v911_v27, %v895_v14 }
0x1586   :  { %915 = vrot.lane.b32.xlu0 %v913_v38, %s2199_s15 }
0x158b   :  { %v1111_v28 = vpop.permute.xlu1 %1110 }
0x158c   :  { %v1113_v31 = vmul.f32 %v1111_v28, %v1095_v21 }
0x158e   :  { %1115 = vrot.lane.b32.xlu1 %v1113_v31, %s2199_s15 }
0x15f8   :  { %v916_v41 = vpop.permute.xlu0 %915 }
0x15f9   :  { %1815 = vmatmul.mubr.msk.f32.vlgmr.msra.gmra.mrb[8].mxu1 %vm210_vm1, %v916_v41 }
0x15fa   :  { %2055 = vmatpush3.bf16.msra.mxu1 %v2446_v57  ;;  %1910 = vmatprep.mubr.msk.f32.mxu1 %vm2202_vm2, %v2200_v22 }
0x15fb   :  { %2056 = vmatprep.subr.bf16.mxu1 %v2201_v52 }
0x15fe   :  { %2058 = vmatpush3.bf16.msra.mxu1 %v2456_v62 }
0x15ff   :  { %2065 = vmatprep.subr.bf16.mxu1 %v2201_v52 }
0x1600   :  { %v1116_v36 = vpop.permute.xlu1 %1115 }
0x1601   :  { %1911 = vmatmul.mubr.msk.f32.vlgmr.msra.gmra.mrb[10].mxu1 %vm210_vm1, %v1116_v36  ;;  %v790_v36 = vadd.f32 %v2413_v15, %v2431_v40 }
0x1602   :  { %2067 = vmatpush3.bf16.msra.mxu1 %v2446_v57  ;;  %1932 = vmatprep.mubr.msk.f32.mxu1 %vm2202_vm2, %v2200_v22 }
0x1603   :  { %2068 = vmatprep.subr.bf16.mxu1 %v2201_v52 }
0x1606   :  { %2070 = vmatpush3.bf16.msra.mxu1 %v2456_v62 }
0x1607   :  { %2077 = vmatprep.subr.bf16.mxu1 %v2201_v52 }
0x16cc   :  { %v985_v42 = vpop.f32.mrb[8].mxu1 }
0x16cd   :  { %v2499_v43 = vpop.f32.mrb[9].mxu1 }
0x16d4   :  { %v1185_v45 = vpop.f32.mrb[10].mxu1 }
0x16d5   :  { %v1189_v46 = vadd.f32 %v1185_v45, %v490_v44  ;;  %v1912_v47 = vpop.f32.mrb[11].mxu1 }
0x16d7   :  { %2160 = vtanh.f32 %v1189_v46  ;;  %v1190_v19 = vmul.f32 0.5, %v1189_v46 }
0x16d9   :  { %2162 = vtanh.f32 %v1190_v19 }
0x16e1   :  { %v2161_v49 = vpop.eup %2160 }
0x16e2   :  { %1197 = vrot.lane.b32.xlu0 %v2161_v49, %s2198_s1 }
0x16e3   :  { %v2163_v50 = vpop.eup %2162 }
0x16e4   :  { %v1192_v51 = vmul.f32 0.5, %v2163_v50 }
0x16e6   :  { %v1193_v53 = vadd.f32 0.5, %v1192_v51 }
0x16e8   :  { %v1195_v23 = vmul.f32 %v1193_v53, %v1107_v34 }
0x1754   :  { %v1198_v54 = vpop.permute.xlu0 %1197 }
0x1755   :  { %v1200_v55 = vmul.f32 %v1198_v54, %v1193_v53 }
0x1757   :  { %1202 = vrot.lane.b32.xlu1 %v1200_v55, %s2199_s15 }
0x17c9   :  { %v1203_v56 = vpop.permute.xlu1 %1202 }
0x17ca   :  { %v1205_v58 = vadd.f32 %v1203_v56, %v1195_v23 }
0x17cc   :  { %2164 = vtanh.f32 %v1205_v58 }
0x17d6   :  { %v2165_v26 = vpop.eup %2164 }
0x17d7   :  { %1208 = vrot.lane.b32.xlu0 %v2165_v26, %s2198_s1 }
0x1849   :  { %v1209_v59 = vpop.permute.xlu0 %1208 }
0x184a   :  { %v1211_v60 = vmul.f32 %v1209_v59, %v1193_v53 }
0x184c   :  { %1213 = vrot.lane.b32.xlu1 %v1211_v60, %s2199_s15 }
0x18be   :  { %v1214_v63 = vpop.permute.xlu1 %1213 }
0x18bf   :  { %1922 = vmatmul.mubr.msk.f32.vlgmr.msra.gmra.mrb[16].mxu0 %vm210_vm1, %v1214_v63 }
0x18c0   :  { %2073 = vmatpush3.bf16.msra.mxu0 %v2446_v57  ;;  %1943 = vmatprep.mubr.msk.f32.mxu0 %vm2202_vm2, %v2200_v22 }
0x18c1   :  { %2074 = vmatprep.subr.bf16.mxu0 %v2201_v52 }
0x18c4   :  { %2076 = vmatpush3.bf16.msra.mxu0 %v2456_v62 }
0x18c5   :  { %2083 = vmatprep.subr.bf16.mxu0 %v2201_v52 }
0x1992   :  { %v1283_v1 = vpop.f32.mrb[16].mxu0 }
0x1993   :  { %v1287_v3 = vadd.f32 %v1283_v1, %v590_v0  ;;  %v1923_v6 = vpop.f32.mrb[17].mxu0 }
0x1995   :  { %2166 = vtanh.f32 %v1287_v3  ;;  %v1288_v8 = vmul.f32 0.5, %v1287_v3 }
0x1997   :  { %2168 = vtanh.f32 %v1288_v8 }
0x199f   :  { %v2167_v7 = vpop.eup %2166 }
0x19a0   :  { %1295 = vrot.lane.b32.xlu0 %v2167_v7, %s2198_s1 }
0x19a1   :  { %v2169_v9 = vpop.eup %2168 }
0x19a2   :  { %v1290_v10 = vmul.f32 0.5, %v2169_v9 }
0x19a4   :  { %v1291_v11 = vadd.f32 0.5, %v1290_v10 }
0x19a6   :  { %v1293_v18 = vmul.f32 %v1291_v11, %v1205_v58  ;;  %v890_v58 = vadd.f32 %v2413_v15, %v2472_v4 }
0x1a12   :  { %v1296_v12 = vpop.permute.xlu0 %1295 }
0x1a13   :  { %v1298_v5 = vmul.f32 %v1296_v12, %v1291_v11 }
0x1a15   :  { %1300 = vrot.lane.b32.xlu1 %v1298_v5, %s2199_s15 }
0x1a87   :  { %v1301_v13 = vpop.permute.xlu1 %1300 }
0x1a88   :  { %v1303_v14 = vadd.f32 %v1301_v13, %v1293_v18  ;;  %v989_v18 = vadd.f32 %v2413_v15, %v2499_v43  ;;  %v1702_v15 = vld [vmem:[%s2587_s6] sm:$0xff]  ;;  %v1703_v43 = vld [vmem:[%s2587_s6 + $0x8] sm:$0xff] }
0x1a8a   :  { %2170 = vtanh.f32 %v1303_v14 }
0x1a94   :  { %v2171_v48 = vpop.eup %2170 }
0x1a95   :  { %1306 = vrot.lane.b32.xlu0 %v2171_v48, %s2198_s1 }
0x1b07   :  { %v1307_v16 = vpop.permute.xlu0 %1306 }
0x1b08   :  { %v1309_v17 = vmul.f32 %v1307_v16, %v1291_v11 }
0x1b0a   :  { %1311 = vrot.lane.b32.xlu1 %v1309_v17, %s2199_s15 }
0x1b7c   :  { %v1312_v61 = vpop.permute.xlu1 %1311 }
0x1b7d   :  { %1933 = vmatmul.mubr.msk.f32.vlgmr.msra.gmra.mrb[12].mxu1 %vm210_vm1, %v1312_v61 }
0x1b7e   :  { %2079 = vmatpush3.bf16.msra.mxu1 %v2446_v57  ;;  %1954 = vmatprep.mubr.msk.f32.mxu1 %vm2202_vm2, %v2200_v22 }
0x1b7f   :  { %2080 = vmatprep.subr.bf16.mxu1 %v2201_v52 }
0x1b82   :  { %2082 = vmatpush3.bf16.msra.mxu1 %v2456_v62 }
0x1b83   :  { %2089 = vmatprep.subr.bf16.mxu1 %v2201_v52 }
0x1c50   :  { %v1381_v21 = vpop.f32.mrb[12].mxu1 }
0x1c51   :  { %v1385_v24 = vadd.f32 %v1381_v21, %v690_v20  ;;  %v1934_v25 = vpop.f32.mrb[13].mxu1 }
0x1c53   :  { %2172 = vtanh.f32 %v1385_v24  ;;  %v1386_v30 = vmul.f32 0.5, %v1385_v24 }
0x1c55   :  { %2174 = vtanh.f32 %v1386_v30 }
0x1c5d   :  { %v2173_v29 = vpop.eup %2172 }
0x1c5e   :  { %1393 = vrot.lane.b32.xlu0 %v2173_v29, %s2198_s1 }
0x1c5f   :  { %v2175_v39 = vpop.eup %2174 }
0x1c60   :  { %v1388_v32 = vmul.f32 0.5, %v2175_v39 }
0x1c62   :  { %v1389_v33 = vadd.f32 0.5, %v1388_v32  ;;  %v1704_v32 = vld [vmem:[%s2587_s6 + $0x10] sm:$0xff] }
0x1c64   :  { %v1391_v37 = vmul.f32 %v1389_v33, %v1303_v14 }
0x1cd0   :  { %v1394_v34 = vpop.permute.xlu0 %1393 }
0x1cd1   :  { %v1396_v35 = vmul.f32 %v1394_v34, %v1389_v33  ;;  %v1705_v34 = vld [vmem:[%s2587_s6 + $0x18] sm:$0xff] }
0x1cd3   :  { %1398 = vrot.lane.b32.xlu1 %v1396_v35, %s2199_s15  ;;  %v2093_v35 = vpack.c.bf16 %v1705_v34, %v1704_v32 }
0x1d45   :  { %v1399_v27 = vpop.permute.xlu1 %1398 }
0x1d46   :  { %v1401_v38 = vadd.f32 %v1399_v27, %v1391_v37 }
0x1d48   :  { %2176 = vtanh.f32 %v1401_v38 }
0x1d52   :  { %v2177_v2 = vpop.eup %2176 }
0x1d53   :  { %1404 = vrot.lane.b32.xlu0 %v2177_v2, %s2198_s1 }
0x1dc5   :  { %v1405_v28 = vpop.permute.xlu0 %1404 }
0x1dc6   :  { %v1407_v31 = vmul.f32 %v1405_v28, %v1389_v33  ;;  %v2090_v33 = vpack.c.bf16 %v1703_v43, %v1702_v15  ;;  %v1823_v28 = vld [vmem:[%s2588_s7] ss:$0 sm:$0xff] }
0x1dc8   :  { %1409 = vrot.lane.b32.xlu1 %v1407_v31, %s2199_s15 }
0x1e3a   :  { %v1410_v41 = vpop.permute.xlu1 %1409 }
0x1e3b   :  { %1944 = vmatmul.mubr.msk.f32.vlgmr.msra.gmra.mrb[18].mxu0 %vm210_vm1, %v1410_v41 }
0x1e3c   :  { %2085 = vmatpush3.bf16.msra.mxu0 %v2446_v57  ;;  %1965 = vmatprep.mubr.msk.f32.mxu0 %vm2202_vm2, %v2200_v22 }
0x1e3d   :  { %2086 = vmatprep.subr.bf16.mxu0 %v2201_v52 }
0x1e40   :  { %2088 = vmatpush3.bf16.msra.mxu0 %v2456_v62 }
0x1f0e   :  { %v1479_v42 = vpop.f32.mrb[18].mxu0 }
0x1f0f   :  { %v1483_v44 = vadd.f32 %v1479_v42, %v790_v36  ;;  %v1945_v45 = vpop.f32.mrb[19].mxu0 }
0x1f11   :  { %2178 = vtanh.f32 %v1483_v44  ;;  %v1484_v47 = vmul.f32 0.5, %v1483_v44 }
0x1f13   :  { %2180 = vtanh.f32 %v1484_v47 }
0x1f1b   :  { %v2179_v46 = vpop.eup %2178 }
0x1f1c   :  { %1491 = vrot.lane.b32.xlu0 %v2179_v46, %s2198_s1 }
0x1f1d   :  { %v2181_v57 = vpop.eup %2180 }
0x1f1e   :  { %v1486_v49 = vmul.f32 0.5, %v2181_v57 }
0x1f20   :  { %v1487_v19 = vadd.f32 0.5, %v1486_v49 }
0x1f22   :  { %v1489_v62 = vmul.f32 %v1487_v19, %v1401_v38 }
0x1f8e   :  { %v1492_v50 = vpop.permute.xlu0 %1491 }
0x1f8f   :  { %v1494_v51 = vmul.f32 %v1492_v50, %v1487_v19 }
0x1f91   :  { %1496 = vrot.lane.b32.xlu1 %v1494_v51, %s2199_s15 }
0x2003   :  { %v1497_v53 = vpop.permute.xlu1 %1496 }
0x2004   :  { %v1499_v54 = vadd.f32 %v1497_v53, %v1489_v62 }
0x2006   :  { %2182 = vtanh.f32 %v1499_v54 }
0x2010   :  { %v2183_v40 = vpop.eup %2182 }
0x2011   :  { %1502 = vrot.lane.b32.xlu0 %v2183_v40, %s2198_s1 }
0x2083   :  { %v1503_v55 = vpop.permute.xlu0 %1502 }
0x2084   :  { %v1505_v23 = vmul.f32 %v1503_v55, %v1487_v19 }
0x2086   :  { %1507 = vrot.lane.b32.xlu1 %v1505_v23, %s2199_s15 }
0x20f8   :  { %v1508_v56 = vpop.permute.xlu1 %1507 }
0x20f9   :  { %1955 = vmatmul.mubr.msk.f32.vlgmr.msra.gmra.mrb[14].mxu1 %vm210_vm1, %v1508_v56 }
0x20fa   :  { %1976 = vmatprep.mubr.msk.f32.mxu1 %vm2202_vm2, %v2200_v22  ;;  %2091 = vmatpush3.bf16.msra.mxu1 %v2090_v33 }
0x20fb   :  { %2092 = vmatprep.subr.bf16.mxu1 %v2201_v52 }
0x20fe   :  { %2094 = vmatpush3.bf16.msra.mxu1 %v2093_v35 }
0x21cc   :  { %v1577_v26 = vpop.f32.mrb[14].mxu1 }
0x21cd   :  { %v1581_v59 = vadd.f32 %v1577_v26, %v890_v58  ;;  %v1956_v60 = vpop.f32.mrb[15].mxu1 }
0x21cf   :  { %2184 = vtanh.f32 %v1581_v59  ;;  %v1582_v0 = vmul.f32 0.5, %v1581_v59 }
0x21d1   :  { %2186 = vtanh.f32 %v1582_v0 }
0x21d9   :  { %v2185_v63 = vpop.eup %2184 }
0x21da   :  { %1589 = vrot.lane.b32.xlu0 %v2185_v63, %s2198_s1 }
0x21db   :  { %v2187_v1 = vpop.eup %2186 }
0x21dc   :  { %v1584_v3 = vmul.f32 0.5, %v2187_v1 }
0x21de   :  { %v1585_v6 = vadd.f32 0.5, %v1584_v3 }
0x21e0   :  { %v1587_v22 = vmul.f32 %v1585_v6, %v1499_v54 }
0x224c   :  { %v1590_v7 = vpop.permute.xlu0 %1589 }
0x224d   :  { %v1592_v8 = vmul.f32 %v1590_v7, %v1585_v6 }
0x224f   :  { %1594 = vrot.lane.b32.xlu1 %v1592_v8, %s2199_s15 }
0x22c1   :  { %v1595_v9 = vpop.permute.xlu1 %1594 }
0x22c2   :  { %v1597_v10 = vadd.f32 %v1595_v9, %v1587_v22 }
0x22c4   :  { %2188 = vtanh.f32 %v1597_v10 }
0x22ce   :  { %v2189_v4 = vpop.eup %2188 }
0x22cf   :  { %1600 = vrot.lane.b32.xlu0 %v2189_v4, %s2198_s1 }
0x2341   :  { %v1601_v11 = vpop.permute.xlu0 %1600 }
0x2342   :  { %v1603_v12 = vmul.f32 %v1601_v11, %v1585_v6 }
0x2344   :  { %1605 = vrot.lane.b32.xlu1 %v1603_v12, %s2199_s15 }
0x23b6   :  { %v1606_v5 = vpop.permute.xlu1 %1605 }
0x23b7   :  { %1966 = vmatmul.mubr.msk.f32.vlgmr.msra.gmra.mrb[20].mxu0 %vm210_vm1, %v1606_v5 }
0x248a   :  { %v1675_v13 = vpop.f32.mrb[20].mxu0 }
0x248b   :  { %v1679_v14 = vadd.f32 %v1675_v13, %v989_v18  ;;  %v1967_v48 = vpop.f32.mrb[21].mxu0 }
0x248d   :  { %2190 = vtanh.f32 %v1679_v14  ;;  %v1680_v17 = vmul.f32 0.5, %v1679_v14 }
0x248f   :  { %2192 = vtanh.f32 %v1680_v17 }
0x2497   :  { %v2191_v16 = vpop.eup %2190 }
0x2498   :  { %1687 = vrot.lane.b32.xlu0 %v2191_v16, %s2198_s1 }
0x2499   :  { %v2193_v61 = vpop.eup %2192 }
0x249a   :  { %v1682_v20 = vmul.f32 0.5, %v2193_v61 }
0x249c   :  { %v1683_v21 = vadd.f32 0.5, %v1682_v20 }
0x249e   :  { %v1685_v29 = vmul.f32 %v1683_v21, %v1597_v10 }
0x250a   :  { %v1688_v24 = vpop.permute.xlu0 %1687 }
0x250b   :  { %v1690_v25 = vmul.f32 %v1688_v24, %v1683_v21 }
0x250d   :  { %1692 = vrot.lane.b32.xlu1 %v1690_v25, %s2199_s15 }
0x257f   :  { %v1693_v30 = vpop.permute.xlu1 %1692 }
0x2580   :  { %v1695_v39 = vadd.f32 %v1693_v30, %v1685_v29 }
0x2582   :  { %2194 = vtanh.f32 %v1695_v39 }
0x258c   :  { %v2195_v37 = vpop.eup %2194 }
0x258d   :  { %1698 = vrot.lane.b32.xlu0 %v2195_v37, %s2198_s1 }
0x25ff   :  { %v1699_v27 = vpop.permute.xlu0 %1698 }
0x2600   :  { %v1701_v38 = vmul.f32 %v1699_v27, %v1683_v21 }
0x2602   :  { %1714 = vrot.lane.b32.xlu1 %v1701_v38, %s2199_s15 }
0x2674   :  { %v1715_v2 = vpop.permute.xlu1 %1714 }
0x2675   :  { %1977 = vmatmul.mubr.msk.f32.vlgmr.msra.gmra.mrb[16].mxu1 %vm210_vm1, %v1715_v2 }
0x2748   :  { %v1784_v31 = vpop.f32.mrb[16].mxu1 }
0x2749   :  { %v1785_v41 = vadd.f32 %v1823_v28, %v1784_v31  ;;  %v1978_v36 = vpop.f32.mrb[17].mxu1 }
0x274b   :  { %v1788_v42 = vmul.f32 0.5, %v1785_v41 }
0x274d   :  { %2196 = vtanh.f32 %v1788_v42 }
0x2757   :  { %v2197_v52 = vpop.eup %2196 }
0x2758   :  { %v1790_v44 = vmul.f32 0.5, %v2197_v52 }
0x275a   :  { %v1791_v45 = vadd.f32 0.5, %v1790_v44 }
0x275c   :  { %1793 = vst.msk [vmem:[%s2589_s8] sm:$0xff] %vm1792_vm3, %v1791_v45 }

</bundles_post_ra>
